<compile_context>
chip_gen: v7x
topology: tpu7x:2x2x1
jax: 0.10.0
libtpu: 0.0.40
codegen_flags: <defaults>
</compile_context>

<pallas_src>
import functools

import jax
import jax.numpy as jnp
from jax.experimental import pallas as pl
from jax.experimental.pallas import tpu as pltpu

IMG = 48          # GLOBAL_IMAGE_SIZE (synthetic, small)
POOL = 2          # GLOBAL_MAX_POOL_SIZE
BATCH = 2
K1, K2, K3 = 3, 5, 5          # conv kernel sizes (from the PyTorch module)
C1, C2, C3 = 8, 16, 32        # conv output channels
FC1 = 64
NCLS = 2


def _round_up(v, m):
    return ((v + m - 1) // m) * m


# ----------------------------- Pallas kernels ------------------------------

def _conv_pool_t_kernel(p_ref, w_ref, b_ref, o_ref, *, m_pad):
    """Transposed conv + bias + ReLU + 2x2 max-pool (single matmul).

    p_ref: (K, 4*m_pad)   im2col patches; columns = pool-offset-major, (n,ph,pw)-minor
    w_ref: (Cout, K)      flattened conv weight (transposed)
    b_ref: (Cout, 1)
    o_ref: (Cout, m_pad)  pooled output, lane-dense (m_pad is a multiple of 128)
    """
    y = jnp.dot(w_ref[...], p_ref[...], preferred_element_type=jnp.float32) + b_ref[...]
    y = jnp.maximum(y, 0.0)
    o_ref[...] = jnp.maximum(
        jnp.maximum(y[:, 0 * m_pad:1 * m_pad], y[:, 1 * m_pad:2 * m_pad]),
        jnp.maximum(y[:, 2 * m_pad:3 * m_pad], y[:, 3 * m_pad:4 * m_pad]))


def _conv3_fc_head_kernel(p_ref, w3_ref, b3_ref, wf1_ref, bf1_ref, wf2_ref, bf2_ref,
                          o_ref, *, s_cnt, n_pad, cout):
    """conv3 + bias + ReLU + 2x2 max-pool + fc1 + ReLU + fc2 + softmax, fully fused.

    p_ref:  (4*s_cnt*n_pad, K3) patches; row = d*(s_cnt*n_pad) + s*n_pad + n
    w3_ref: (K3, cout);  b3_ref: (1, cout)
    wf1_ref:(s_cnt*cout, FC1)  fc1 weight with rows permuted to (spatial, channel) order
    o_ref:  (n_pad, NCLS) softmax probabilities (rows >= batch are padding)
    """
    blk = s_cnt * n_pad
    y = jnp.dot(p_ref[...], w3_ref[...], preferred_element_type=jnp.float32) + b3_ref[...]
    y = jnp.maximum(y, 0.0)                                    # (4*blk, cout)
    pooled = y[0:blk, :]
    for d in range(1, POOL * POOL):
        pooled = jnp.maximum(pooled, y[d * blk:(d + 1) * blk, :])   # (blk, cout)

    # fc1 with the flatten folded into wf1:
    #   h[n] = sum_s pooled[s*n_pad + n, :] @ wf1[s*cout:(s+1)*cout, :]
    wf1 = wf1_ref[...]
    acc = jnp.dot(pooled[0:n_pad, :], wf1[0:cout, :], preferred_element_type=jnp.float32)
    for s in range(1, s_cnt):
        acc = acc + jnp.dot(pooled[s * n_pad:(s + 1) * n_pad, :],
                            wf1[s * cout:(s + 1) * cout, :],
                            preferred_element_type=jnp.float32)
    h = jnp.maximum(acc + bf1_ref[...], 0.0)                   # (n_pad, FC1)

    logits = jnp.dot(h, wf2_ref[...], preferred_element_type=jnp.float32) + bf2_ref[...]
    mx = jnp.max(logits, axis=1, keepdims=True)
    e = jnp.exp(logits - mx)
    o_ref[...] = e * pl.reciprocal(jnp.sum(e, axis=1, keepdims=True), approx=False)


# ------------------------------ JAX wrappers --------------------------------

def _pool_offset_patches(x, ksize, hp, wp):
    """x: (N,H,W,C) -> (4, N, hp, wp, K) im2col patches, one block per 2x2 pool offset."""
    n, _, _, c = x.shape
    k = ksize * ksize * c
    he, we = POOL * hp, POOL * wp
    slices = [x[:, kh:kh + he, kw:kw + we, :]
              for kh in range(ksize) for kw in range(ksize)]
    p = jnp.stack(slices, axis=3)                     # (N, he, we, K*K, C)
    p = p.reshape(n, hp, POOL, wp, POOL, k)
    p = p.transpose(2, 4, 0, 1, 3, 5)                 # (dh, dw, N, hp, wp, k)
    return p.reshape(POOL * POOL, n, hp, wp, k)


def conv_pool_transposed(x, w_t, b_t, ksize):
    """x: (N,H,W,Cin); w_t: (Cout, K); b_t: (Cout,1) -> (N, Hp, Wp, Cout)."""
    n, h, wd, _ = x.shape
    cout, k = w_t.shape
    ho, wo = h - ksize + 1, wd - ksize + 1
    hp, wp = ho // POOL, wo // POOL
    m = n * hp * wp
    m_pad = _round_up(m, 128)           # lane-aligned pool-offset blocks in the kernel
    p = _pool_offset_patches(x, ksize, hp, wp).reshape(POOL * POOL, m, k)
    if m_pad > m:
        p = jnp.pad(p, ((0, 0), (0, m_pad - m), (0, 0)))
    p_t = p.transpose(2, 0, 1).reshape(k, POOL * POOL * m_pad)
    out = pl.pallas_call(
        functools.partial(_conv_pool_t_kernel, m_pad=m_pad),
        out_shape=jax.ShapeDtypeStruct((cout, m_pad), jnp.float32),
        in_specs=[pl.BlockSpec(memory_space=pltpu.MemorySpace.VMEM)] * 3,
        out_specs=pl.BlockSpec(memory_space=pltpu.MemorySpace.VMEM),
    )(p_t, w_t, b_t)
    # columns are (n, ph, pw) row-major
    return out[:, :m].reshape(cout, n, hp, wp).transpose(1, 2, 3, 0)   # NHWC


def conv3_fc_head(x, kp):
    n, h, wd, _ = x.shape
    k3, cout = kp["w3"].shape
    ho, wo = h - K3 + 1, wd - K3 + 1
    hp, wp = ho // POOL, wo // POOL
    s_cnt = hp * wp
    n_pad = _round_up(n, 8)
    p = _pool_offset_patches(x, K3, hp, wp)                      # (4, n, hp, wp, K3)
    p = p.transpose(0, 2, 3, 1, 4).reshape(POOL * POOL, s_cnt, n, k3)
    p = jnp.pad(p, ((0, 0), (0, 0), (0, n_pad - n), (0, 0)))
    p = p.reshape(POOL * POOL * s_cnt * n_pad, k3)
    out = pl.pallas_call(
        functools.partial(_conv3_fc_head_kernel, s_cnt=s_cnt, n_pad=n_pad, cout=cout),
        out_shape=jax.ShapeDtypeStruct((n_pad, kp["wf2"].shape[1]), jnp.float32),
        in_specs=[pl.BlockSpec(memory_space=pltpu.MemorySpace.VMEM)] * 7,
        out_specs=pl.BlockSpec(memory_space=pltpu.MemorySpace.VMEM),
    )(p, kp["w3"], kp["b3"], kp["wf1"], kp["bf1"], kp["wf2"], kp["bf2"])
    return out[:n]


def forward(kparams, x_nchw):
    x = jnp.transpose(x_nchw, (0, 2, 3, 1)).astype(jnp.float32)   # NCHW -> NHWC
    x = conv_pool_transposed(x, kparams["w1t"], kparams["b1t"], K1)
    x = conv_pool_transposed(x, kparams["w2t"], kparams["b2t"], K2)
    return conv3_fc_head(x, kparams)


# ------------------------------- parameters ---------------------------------

def _to_linear_size(img):
    s = (img - K1 + 1) // POOL
    s = (s - K2 + 1) // POOL
    s = (s - K3 + 1) // POOL
    return C3 * s * s


def init_params(key):
    def uni(k, shape, fan_in):
        bound = 1.0 / jnp.sqrt(jnp.asarray(fan_in, jnp.float32))
        return jax.random.uniform(k, shape, jnp.float32, -bound, bound)

    ks = jax.random.split(key, 10)
    to_linear = _to_linear_size(IMG)
    return {
        "w1c": uni(ks[0], (K1, K1, 1, C1), 1 * K1 * K1),
        "b1c": uni(ks[1], (C1,), 1 * K1 * K1),
        "w2c": uni(ks[2], (K2, K2, C1, C2), C1 * K2 * K2),
        "b2c": uni(ks[3], (C2,), C1 * K2 * K2),
        "w3c": uni(ks[4], (K3, K3, C2, C3), C2 * K3 * K3),
        "b3c": uni(ks[5], (C3,), C2 * K3 * K3),
        "wf1": uni(ks[6], (to_linear, FC1), to_linear),
        "bf1": uni(ks[7], (FC1,), to_linear),
        "wf2": uni(ks[8], (FC1, NCLS), FC1),
        "bf2": uni(ks[9], (NCLS,), FC1),
    }


def prepare_params(params):
    """One-time (outside jit) reshape of PyTorch-style params into kernel layouts.

    Folds the PyTorch (C,H,W) flatten order into a row permutation of the fc1 weight
    (row c*(hp*wp)+s -> row s*C3+c) so the fused conv3+head kernel consumes the pooled
    conv3 output directly -- zero runtime cost."""
    wf1 = params["wf1"]
    s_cnt = wf1.shape[0] // C3
    wf1_k = wf1.reshape(C3, s_cnt, FC1).transpose(1, 0, 2).reshape(C3 * s_cnt, FC1)
    return {
        "w1t": params["w1c"].reshape(K1 * K1 * 1, C1).T,          # (C1, 9)
        "b1t": params["b1c"].reshape(C1, 1),
        "w2t": params["w2c"].reshape(K2 * K2 * C1, C2).T,         # (C2, 200)
        "b2t": params["b2c"].reshape(C2, 1),
        "w3":  params["w3c"].reshape(K3 * K3 * C2, C3),           # (400, C3)
        "b3":  params["b3c"].reshape(1, C3),
        "wf1": wf1_k,                                             # (s*C3, FC1)
        "bf1": params["bf1"].reshape(1, FC1),
        "wf2": params["wf2"],
        "bf2": params["bf2"].reshape(1, NCLS),
    }


def reference(params, x_nchw):
    """Independent pure-JAX reference (lax.conv + reduce_window) for validation."""
    x = jnp.transpose(x_nchw, (0, 2, 3, 1)).astype(jnp.float32)

    def layer(x, w, b):
        y = jax.lax.conv_general_dilated(
            x, w, window_strides=(1, 1), padding="VALID",
            dimension_numbers=("NHWC", "HWIO", "NHWC"))
        y = jax.nn.relu(y + b.reshape(1, 1, 1, -1))
        return jax.lax.reduce_window(y, -jnp.inf, jax.lax.max,
                                     (1, POOL, POOL, 1), (1, POOL, POOL, 1), "VALID")

    x = layer(x, params["w1c"], params["b1c"])
    x = layer(x, params["w2c"], params["b2c"])
    x = layer(x, params["w3c"], params["b3c"])
    x = jnp.transpose(x, (0, 3, 1, 2)).reshape(x.shape[0], -1)   # PyTorch (C,H,W) flatten
    h = jax.nn.relu(x @ params["wf1"] + params["bf1"])
    logits = h @ params["wf2"] + params["bf2"]
    return jax.nn.softmax(logits, axis=1)


if __name__ == "__main__":
    key = jax.random.PRNGKey(0)
    pkey, xkey = jax.random.split(key)
    params = init_params(pkey)
    kparams = prepare_params(params)      # one-time weight re-layout, outside jit
    # PyTorch-shaped NCHW input: (batch, 1, IMG, IMG)
    x = jax.random.normal(xkey, (BATCH, 1, IMG, IMG), jnp.float32)

    out = jax.jit(forward)(kparams, x)
    out = jax.block_until_ready(out)

    ref = reference(params, x)
    assert out.shape == (BATCH, NCLS), out.shape
    assert bool(jnp.allclose(jnp.sum(out, axis=1), 1.0, atol=1e-5))
    assert bool(jnp.allclose(out, ref, atol=1e-4, rtol=1e-4)), (out, ref)
    print("KERNEL_OK")
</pallas_src>

<mosaic_0001>
module attributes {stable_mosaic.version = 11 : i64} {
  func.func @_conv_pool_t_kernel(%arg0: memref<9x4608xf32, #tpu.memory_space<vmem>>, %arg1: memref<8x9xf32, #tpu.memory_space<vmem>>, %arg2: memref<8x1xf32, #tpu.memory_space<vmem>>, %arg3: memref<8x1152xf32, #tpu.memory_space<vmem>>) attributes {dimension_semantics = [], scalar_prefetch = 0 : i64, scratch_operands = 0 : i64, tpu.core_type = #tpu.core_type<tc>} {
    %c0 = arith.constant 0 : index
    %c0_0 = arith.constant 0 : index
    %0 = vector.load %arg1[%c0, %c0_0] : memref<8x9xf32, #tpu.memory_space<vmem>>, vector<8x9xf32>
    %c0_1 = arith.constant 0 : index
    %c0_2 = arith.constant 0 : index
    %1 = vector.load %arg0[%c0_1, %c0_2] : memref<9x4608xf32, #tpu.memory_space<vmem>>, vector<9x4608xf32>
    %cst = arith.constant dense<0.000000e+00> : vector<8x4608xf32>
    %2 = tpu.matmul %0, %1, %cst {dimension_numbers = #tpu.dot_dimension_numbers<[1], [0], [0], [1], [0, 0, 1, 1], [], []>} : vector<8x9xf32>, vector<9x4608xf32>, vector<8x4608xf32> -> vector<8x4608xf32>
    %c0_3 = arith.constant 0 : index
    %c0_4 = arith.constant 0 : index
    %3 = vector.load %arg2[%c0_3, %c0_4] : memref<8x1xf32, #tpu.memory_space<vmem>>, vector<8x1xf32>
    %4 = vector.broadcast %3 : vector<8x1xf32> to vector<8x4608xf32>
    %5 = arith.addf %2, %4 : vector<8x4608xf32>
    %cst_5 = arith.constant 0.000000e+00 : f32
    %6 = vector.broadcast %cst_5 : f32 to vector<8x4608xf32>
    %7 = arith.maximumf %5, %6 : vector<8x4608xf32>
    %8 = vector.extract_strided_slice %7 {offsets = [0, 0], sizes = [8, 1152], strides = [1, 1]} : vector<8x4608xf32> to vector<8x1152xf32>
    %9 = vector.extract_strided_slice %7 {offsets = [0, 1152], sizes = [8, 1152], strides = [1, 1]} : vector<8x4608xf32> to vector<8x1152xf32>
    %10 = arith.maximumf %8, %9 : vector<8x1152xf32>
    %11 = vector.extract_strided_slice %7 {offsets = [0, 2304], sizes = [8, 1152], strides = [1, 1]} : vector<8x4608xf32> to vector<8x1152xf32>
    %12 = vector.extract_strided_slice %7 {offsets = [0, 3456], sizes = [8, 1152], strides = [1, 1]} : vector<8x4608xf32> to vector<8x1152xf32>
    %13 = arith.maximumf %11, %12 : vector<8x1152xf32>
    %14 = arith.maximumf %10, %13 : vector<8x1152xf32>
    %c0_6 = arith.constant 0 : index
    %c0_7 = arith.constant 0 : index
    %15 = vector.load %arg3[%c0_6, %c0_7] : memref<8x1152xf32, #tpu.memory_space<vmem>>, vector<8x1152xf32>
    tpu.vector_store %arg3[%c0_6, %c0_7], %14 {strides = array<i32>} : memref<8x1152xf32, #tpu.memory_space<vmem>>, vector<8x1152xf32>,
    return
  }
}

module attributes {stable_mosaic.version = 11 : i64} {
  func.func @_conv_pool_t_kernel(%arg0: memref<200x1024xf32, #tpu.memory_space<vmem>>, %arg1: memref<16x200xf32, #tpu.memory_space<vmem>>, %arg2: memref<16x1xf32, #tpu.memory_space<vmem>>, %arg3: memref<16x256xf32, #tpu.memory_space<vmem>>) attributes {dimension_semantics = [], scalar_prefetch = 0 : i64, scratch_operands = 0 : i64, tpu.core_type = #tpu.core_type<tc>} {
    %c0 = arith.constant 0 : index
    %c0_0 = arith.constant 0 : index
    %0 = vector.load %arg1[%c0, %c0_0] : memref<16x200xf32, #tpu.memory_space<vmem>>, vector<16x200xf32>
    %c0_1 = arith.constant 0 : index
    %c0_2 = arith.constant 0 : index
    %1 = vector.load %arg0[%c0_1, %c0_2] : memref<200x1024xf32, #tpu.memory_space<vmem>>, vector<200x1024xf32>
    %cst = arith.constant dense<0.000000e+00> : vector<16x1024xf32>
    %2 = tpu.matmul %0, %1, %cst {dimension_numbers = #tpu.dot_dimension_numbers<[1], [0], [0], [1], [0, 0, 1, 1], [], []>} : vector<16x200xf32>, vector<200x1024xf32>, vector<16x1024xf32> -> vector<16x1024xf32>
    %c0_3 = arith.constant 0 : index
    %c0_4 = arith.constant 0 : index
    %3 = vector.load %arg2[%c0_3, %c0_4] : memref<16x1xf32, #tpu.memory_space<vmem>>, vector<16x1xf32>
    %4 = vector.broadcast %3 : vector<16x1xf32> to vector<16x1024xf32>
    %5 = arith.addf %2, %4 : vector<16x1024xf32>
    %cst_5 = arith.constant 0.000000e+00 : f32
    %6 = vector.broadcast %cst_5 : f32 to vector<16x1024xf32>
    %7 = arith.maximumf %5, %6 : vector<16x1024xf32>
    %8 = vector.extract_strided_slice %7 {offsets = [0, 0], sizes = [16, 256], strides = [1, 1]} : vector<16x1024xf32> to vector<16x256xf32>
    %9 = vector.extract_strided_slice %7 {offsets = [0, 256], sizes = [16, 256], strides = [1, 1]} : vector<16x1024xf32> to vector<16x256xf32>
    %10 = arith.maximumf %8, %9 : vector<16x256xf32>
    %11 = vector.extract_strided_slice %7 {offsets = [0, 512], sizes = [16, 256], strides = [1, 1]} : vector<16x1024xf32> to vector<16x256xf32>
    %12 = vector.extract_strided_slice %7 {offsets = [0, 768], sizes = [16, 256], strides = [1, 1]} : vector<16x1024xf32> to vector<16x256xf32>
    %13 = arith.maximumf %11, %12 : vector<16x256xf32>
    %14 = arith.maximumf %10, %13 : vector<16x256xf32>
    %c0_6 = arith.constant 0 : index
    %c0_7 = arith.constant 0 : index
    %15 = vector.load %arg3[%c0_6, %c0_7] : memref<16x256xf32, #tpu.memory_space<vmem>>, vector<16x256xf32>
    tpu.vector_store %arg3[%c0_6, %c0_7], %14 {strides = array<i32>} : memref<16x256xf32, #tpu.memory_space<vmem>>, vector<16x256xf32>,
    return
  }
}

module attributes {stable_mosaic.version = 11 : i64} {
  func.func @_conv3_fc_head_kernel(%arg0: memref<128x400xf32, #tpu.memory_space<vmem>>, %arg1: memref<400x32xf32, #tpu.memory_space<vmem>>, %arg2: memref<1x32xf32, #tpu.memory_space<vmem>>, %arg3: memref<128x64xf32, #tpu.memory_space<vmem>>, %arg4: memref<1x64xf32, #tpu.memory_space<vmem>>, %arg5: memref<64x2xf32, #tpu.memory_space<vmem>>, %arg6: memref<1x2xf32, #tpu.memory_space<vmem>>, %arg7: memref<8x2xf32, #tpu.memory_space<vmem>>) attributes {dimension_semantics = [], scalar_prefetch = 0 : i64, scratch_operands = 0 : i64, tpu.core_type = #tpu.core_type<tc>} {
    %c0 = arith.constant 0 : index
    %c0_0 = arith.constant 0 : index
    %0 = vector.load %arg0[%c0, %c0_0] : memref<128x400xf32, #tpu.memory_space<vmem>>, vector<128x400xf32>
    %c0_1 = arith.constant 0 : index
    %c0_2 = arith.constant 0 : index
    %1 = vector.load %arg1[%c0_1, %c0_2] : memref<400x32xf32, #tpu.memory_space<vmem>>, vector<400x32xf32>
    %cst = arith.constant dense<0.000000e+00> : vector<128x32xf32>
    %2 = tpu.matmul %0, %1, %cst {dimension_numbers = #tpu.dot_dimension_numbers<[1], [0], [0], [1], [0, 0, 1, 1], [], []>} : vector<128x400xf32>, vector<400x32xf32>, vector<128x32xf32> -> vector<128x32xf32>
    %c0_3 = arith.constant 0 : index
    %c0_4 = arith.constant 0 : index
    %3 = vector.load %arg2[%c0_3, %c0_4] : memref<1x32xf32, #tpu.memory_space<vmem>>, vector<1x32xf32>
    %4 = vector.broadcast %3 : vector<1x32xf32> to vector<128x32xf32>
    %5 = arith.addf %2, %4 : vector<128x32xf32>
    %cst_5 = arith.constant 0.000000e+00 : f32
    %6 = vector.broadcast %cst_5 : f32 to vector<128x32xf32>
    %7 = arith.maximumf %5, %6 : vector<128x32xf32>
    %8 = vector.extract_strided_slice %7 {offsets = [0, 0], sizes = [32, 32], strides = [1, 1]} : vector<128x32xf32> to vector<32x32xf32>
    %9 = vector.extract_strided_slice %7 {offsets = [32, 0], sizes = [32, 32], strides = [1, 1]} : vector<128x32xf32> to vector<32x32xf32>
    %10 = arith.maximumf %8, %9 : vector<32x32xf32>
    %11 = vector.extract_strided_slice %7 {offsets = [64, 0], sizes = [32, 32], strides = [1, 1]} : vector<128x32xf32> to vector<32x32xf32>
    %12 = arith.maximumf %10, %11 : vector<32x32xf32>
    %13 = vector.extract_strided_slice %7 {offsets = [96, 0], sizes = [32, 32], strides = [1, 1]} : vector<128x32xf32> to vector<32x32xf32>
    %14 = arith.maximumf %12, %13 : vector<32x32xf32>
    %c0_6 = arith.constant 0 : index
    %c0_7 = arith.constant 0 : index
    %15 = vector.load %arg3[%c0_6, %c0_7] : memref<128x64xf32, #tpu.memory_space<vmem>>, vector<128x64xf32>
    %16 = vector.extract_strided_slice %14 {offsets = [0, 0], sizes = [8, 32], strides = [1, 1]} : vector<32x32xf32> to vector<8x32xf32>
    %17 = vector.extract_strided_slice %15 {offsets = [0, 0], sizes = [32, 64], strides = [1, 1]} : vector<128x64xf32> to vector<32x64xf32>
    %cst_8 = arith.constant dense<0.000000e+00> : vector<8x64xf32>
    %18 = tpu.matmul %16, %17, %cst_8 {dimension_numbers = #tpu.dot_dimension_numbers<[1], [0], [0], [1], [0, 0, 1, 1], [], []>} : vector<8x32xf32>, vector<32x64xf32>, vector<8x64xf32> -> vector<8x64xf32>
    %19 = vector.extract_strided_slice %14 {offsets = [8, 0], sizes = [8, 32], strides = [1, 1]} : vector<32x32xf32> to vector<8x32xf32>
    %20 = vector.extract_strided_slice %15 {offsets = [32, 0], sizes = [32, 64], strides = [1, 1]} : vector<128x64xf32> to vector<32x64xf32>
    %cst_9 = arith.constant dense<0.000000e+00> : vector<8x64xf32>
    %21 = tpu.matmul %19, %20, %cst_9 {dimension_numbers = #tpu.dot_dimension_numbers<[1], [0], [0], [1], [0, 0, 1, 1], [], []>} : vector<8x32xf32>, vector<32x64xf32>, vector<8x64xf32> -> vector<8x64xf32>
    %22 = arith.addf %18, %21 : vector<8x64xf32>
    %23 = vector.extract_strided_slice %14 {offsets = [16, 0], sizes = [8, 32], strides = [1, 1]} : vector<32x32xf32> to vector<8x32xf32>
    %24 = vector.extract_strided_slice %15 {offsets = [64, 0], sizes = [32, 64], strides = [1, 1]} : vector<128x64xf32> to vector<32x64xf32>
    %cst_10 = arith.constant dense<0.000000e+00> : vector<8x64xf32>
    %25 = tpu.matmul %23, %24, %cst_10 {dimension_numbers = #tpu.dot_dimension_numbers<[1], [0], [0], [1], [0, 0, 1, 1], [], []>} : vector<8x32xf32>, vector<32x64xf32>, vector<8x64xf32> -> vector<8x64xf32>
    %26 = arith.addf %22, %25 : vector<8x64xf32>
    %27 = vector.extract_strided_slice %14 {offsets = [24, 0], sizes = [8, 32], strides = [1, 1]} : vector<32x32xf32> to vector<8x32xf32>
    %28 = vector.extract_strided_slice %15 {offsets = [96, 0], sizes = [32, 64], strides = [1, 1]} : vector<128x64xf32> to vector<32x64xf32>
    %cst_11 = arith.constant dense<0.000000e+00> : vector<8x64xf32>
    %29 = tpu.matmul %27, %28, %cst_11 {dimension_numbers = #tpu.dot_dimension_numbers<[1], [0], [0], [1], [0, 0, 1, 1], [], []>} : vector<8x32xf32>, vector<32x64xf32>, vector<8x64xf32> -> vector<8x64xf32>
    %30 = arith.addf %26, %29 : vector<8x64xf32>
    %c0_12 = arith.constant 0 : index
    %c0_13 = arith.constant 0 : index
    %31 = vector.load %arg4[%c0_12, %c0_13] : memref<1x64xf32, #tpu.memory_space<vmem>>, vector<1x64xf32>
    %32 = vector.broadcast %31 : vector<1x64xf32> to vector<8x64xf32>
    %33 = arith.addf %30, %32 : vector<8x64xf32>
    %cst_14 = arith.constant 0.000000e+00 : f32
    %34 = vector.broadcast %cst_14 : f32 to vector<8x64xf32>
    %35 = arith.maximumf %33, %34 : vector<8x64xf32>
    %c0_15 = arith.constant 0 : index
    %c0_16 = arith.constant 0 : index
    %36 = vector.load %arg5[%c0_15, %c0_16] : memref<64x2xf32, #tpu.memory_space<vmem>>, vector<64x2xf32>
    %cst_17 = arith.constant dense<0.000000e+00> : vector<8x2xf32>
    %37 = tpu.matmul %35, %36, %cst_17 {dimension_numbers = #tpu.dot_dimension_numbers<[1], [0], [0], [1], [0, 0, 1, 1], [], []>} : vector<8x64xf32>, vector<64x2xf32>, vector<8x2xf32> -> vector<8x2xf32>
    %c0_18 = arith.constant 0 : index
    %c0_19 = arith.constant 0 : index
    %38 = vector.load %arg6[%c0_18, %c0_19] : memref<1x2xf32, #tpu.memory_space<vmem>>, vector<1x2xf32>
    %39 = vector.broadcast %38 : vector<1x2xf32> to vector<8x2xf32>
    %40 = arith.addf %37, %39 : vector<8x2xf32>
    %cst_20 = arith.constant dense<0xFF800000> : vector<8xf32>
    %41 = vector.multi_reduction <maximumf>, %40, %cst_20 [1] : vector<8x2xf32> to vector<8xf32>
    %42 = vector.shape_cast %41 : vector<8xf32> to vector<8x1xf32>
    %43 = vector.broadcast %42 : vector<8x1xf32> to vector<8x2xf32>
    %44 = arith.subf %40, %43 : vector<8x2xf32>
    %45 = math.exp %44 : vector<8x2xf32>
    %cst_21 = arith.constant dense<0.000000e+00> : vector<8xf32>
    %46 = vector.multi_reduction <add>, %45, %cst_21 [1] : vector<8x2xf32> to vector<8xf32>
    %47 = vector.shape_cast %46 : vector<8xf32> to vector<8x1xf32>
    %48 = tpu.reciprocal %47 : vector<8x1xf32> -> vector<8x1xf32>
    %49 = vector.broadcast %48 : vector<8x1xf32> to vector<8x2xf32>
    %50 = arith.mulf %45, %49 : vector<8x2xf32>
    %c0_22 = arith.constant 0 : index
    %c0_23 = arith.constant 0 : index
    %51 = vector.load %arg7[%c0_22, %c0_23] : memref<8x2xf32, #tpu.memory_space<vmem>>, vector<8x2xf32>
    tpu.vector_store %arg7[%c0_22, %c0_23], %50 {strides = array<i32>} : memref<8x2xf32, #tpu.memory_space<vmem>>, vector<8x2xf32>,
    return
  }
}

</mosaic_0001>

<bundles_post_ra>
// kernel: forward.3
= control target key start
LH: loop header
LB: loop body
LE: loop exit
PB: predicated region body
PF: predicated region fallthrough
CT: control target
= control target key end

     0   :  { %vm97_vm0 = vcmask 1040384   ;;  %vm1726_vm1 = vmmov 1   ;;  %v1727_v3 = vmov 0.0   ;;  %v1728_v8 = vmov 0   ;;  %s2195_s0 = inlined_call_operand.vmem [shape: f32[9,4608], index: 0, kind: input, shape index: {}]   ;;  %s2196_s1 = inlined_call_operand.vmem [shape: f32[8,9], index: 1, kind: input, shape index: {}]   ;;  %s2197_s2 = inlined_call_operand.vmem [shape: f32[8,1], index: 2, kind: input, shape index: {}]   ;;  %s2198_s3 = inlined_call_operand.vmem [shape: f32[8,1152], index: 3, kind: output, shape index: {}]  }
   0x1   :  { %v16_v0 = vld [vmem:[%s2195_s0 + $0x8] sm:$0xff]  ;;  %vm1755_vm2 = vmpackc.low %vm97_vm0, %vm1726_vm1  ;;  %270 = vmatprep.mubr.f32.mxu0 %v1727_v3  ;;  %341 = vmatprep.mubr.f32.mxu1 %v1727_v3  ;;  %v18_v5 = vld [vmem:[%s2195_s0 + $0x18] sm:$0xff]  ;;  %vm93_vm3 = vcmask 72704  }
   0x2   :  { %v52_v1 = vld [vmem:[%s2195_s0 + $0x128] sm:$0x1]  ;;  %v54_v6 = vld [vmem:[%s2195_s0 + $0x138] sm:$0x1]  ;;  %v15_v7 = vld [vmem:[%s2195_s0] sm:$0xff]  ;;  %1725 = vset.pattern.permute.xlu0 %v1728_v8 }
   0x3   :  { %v1614_v4 = vpack.c.bf16 %v52_v1, %v16_v0  ;;  %v1620_v9 = vpack.c.bf16 %v54_v6, %v18_v5  ;;  %v51_v10 = vld [vmem:[%s2195_s0 + $0x120] sm:$0x1]  ;;  %v17_v11 = vld [vmem:[%s2195_s0 + $0x10] sm:$0xff]  ;;  %v20_v16 = vld [vmem:[%s2195_s0 + $0x28] sm:$0xff] }
   0x4   :  { %v53_v12 = vld [vmem:[%s2195_s0 + $0x130] sm:$0x1]  ;;  %v1617_v13 = vpack.c.bf16 %v51_v10, %v15_v7  ;;  %v1784_v15 = vld [vmem:[%s2196_s1] sm:$0xff]  ;;  %v56_v17 = vld [vmem:[%s2195_s0 + $0x148] sm:$0x1] }
   0x5   :  { %1616 = vmatprep.subr.msk.bf16.mxu0 %vm1755_vm2, %v1614_v4  ;;  %v1623_v14 = vpack.c.bf16 %v53_v12, %v17_v11  ;;  %1622 = vmatprep.subr.msk.bf16.mxu1 %vm1755_vm2, %v1620_v9  ;;  %v1626_v18 = vpack.c.bf16 %v56_v17, %v20_v16  ;;  %v22_v19 = vld [vmem:[%s2195_s0 + $0x38] sm:$0xff]  ;;  %v19_v21 = vld [vmem:[%s2195_s0 + $0x20] sm:$0xff]  ;;  %v21_v24 = vld [vmem:[%s2195_s0 + $0x30] sm:$0xff] }
   0x6   :  { %v58_v20 = vld [vmem:[%s2195_s0 + $0x158] sm:$0x1]  ;;  %1619 = vmatpush1.bf16.msk.msra.mxu0 %vm1755_vm2, %v1617_v13  ;;  %v55_v23 = vld [vmem:[%s2195_s0 + $0x140] sm:$0x1]  ;;  %v57_v25 = vld [vmem:[%s2195_s0 + $0x150] sm:$0x1] }
   0x7   :  { %1625 = vmatpush1.bf16.msk.msra.mxu1 %vm1755_vm2, %v1623_v14  ;;  %v1632_v22 = vpack.c.bf16 %v58_v20, %v22_v19  ;;  %1628 = vmatprep.subr.msk.bf16.mxu0 %vm1755_vm2, %v1626_v18  ;;  %v1629_v26 = vpack.c.bf16 %v55_v23, %v19_v21  ;;  %v1635_v27 = vpack.c.bf16 %v57_v25, %v21_v24  ;;  %v24_v28 = vld [vmem:[%s2195_s0 + $0x48] sm:$0xff]  ;;  %v26_v30 = vld [vmem:[%s2195_s0 + $0x58] sm:$0xff]  ;;  %v23_v33 = vld [vmem:[%s2195_s0 + $0x40] sm:$0xff] }
   0x8   :  { %v60_v29 = vld [vmem:[%s2195_s0 + $0x168] sm:$0x1]  ;;  %v62_v32 = vld [vmem:[%s2195_s0 + $0x178] sm:$0x1]  ;;  %v59_v34 = vld [vmem:[%s2195_s0 + $0x160] sm:$0x1] }
   0x9   :  { %1634 = vmatprep.subr.msk.bf16.mxu1 %vm1755_vm2, %v1632_v22  ;;  %v1638_v31 = vpack.c.bf16 %v60_v29, %v24_v28  ;;  %1562 = vmatmul.mubr.msk.f32.vlgmr.msra.gmra.mrb[0].mxu0 %vm93_vm3, %v1784_v15  ;;  %v1644_v35 = vpack.c.bf16 %v62_v32, %v26_v30  ;;  %v25_v36 = vld [vmem:[%s2195_s0 + $0x50] sm:$0xff]  ;;  %v28_v38 = vld [vmem:[%s2195_s0 + $0x68] sm:$0xff]  ;;  %v1641_v39 = vpack.c.bf16 %v59_v34, %v23_v33  ;;  %v30_v42 = vld [vmem:[%s2195_s0 + $0x78] sm:$0xff] }
   0xa   :  { %1565 = vmatmul.mubr.msk.f32.vlgmr.msra.gmra.mrb[0].mxu1 %vm93_vm3, %v1784_v15  ;;  %v61_v37 = vld [vmem:[%s2195_s0 + $0x170] sm:$0x1]  ;;  %1631 = vmatpush1.bf16.msk.msra.mxu0 %vm1755_vm2, %v1629_v26  ;;  %v64_v41 = vld [vmem:[%s2195_s0 + $0x188] sm:$0x1]  ;;  %v66_v43 = vld [vmem:[%s2195_s0 + $0x198] sm:$0x1] }
   0xb   :  { %1637 = vmatpush1.bf16.msk.msra.mxu1 %vm1755_vm2, %v1635_v27  ;;  %v1647_v40 = vpack.c.bf16 %v61_v37, %v25_v36  ;;  %412 = vmatprep.mubr.f32.mxu0 %v1727_v3  ;;  %v27_v44 = vld [vmem:[%s2195_s0 + $0x60] sm:$0xff]  ;;  %v29_v46 = vld [vmem:[%s2195_s0 + $0x70] sm:$0xff]  ;;  %v1650_v47 = vpack.c.bf16 %v64_v41, %v28_v38  ;;  %v1656_v48 = vpack.c.bf16 %v66_v43, %v30_v42  ;;  %v32_v50 = vld [vmem:[%s2195_s0 + $0x88] sm:$0xff] }
   0xc   :  { %483 = vmatprep.mubr.f32.mxu1 %v1727_v3  ;;  %v63_v45 = vld [vmem:[%s2195_s0 + $0x180] sm:$0x1]  ;;  %1640 = vmatprep.subr.msk.bf16.mxu0 %vm1755_vm2, %v1638_v31  ;;  %v65_v49 = vld [vmem:[%s2195_s0 + $0x190] sm:$0x1]  ;;  %v68_v51 = vld [vmem:[%s2195_s0 + $0x1a8] sm:$0x1] }
   0xd   :  { %1646 = vmatprep.subr.msk.bf16.mxu1 %vm1755_vm2, %v1644_v35  ;;  %1568 = vmatmul.mubr.msk.f32.vlgmr.msra.gmra.mrb[2].mxu0 %vm93_vm3, %v1784_v15  ;;  %v34_v52 = vld [vmem:[%s2195_s0 + $0x98] sm:$0xff]  ;;  %v1653_v54 = vpack.c.bf16 %v63_v45, %v27_v44  ;;  %v1659_v55 = vpack.c.bf16 %v65_v49, %v29_v46  ;;  %v31_v56 = vld [vmem:[%s2195_s0 + $0x80] sm:$0xff]  ;;  %v33_v58 = vld [vmem:[%s2195_s0 + $0x90] sm:$0xff]  ;;  %v1662_v60 = vpack.c.bf16 %v68_v51, %v32_v50 }
   0xe   :  { %1571 = vmatmul.mubr.msk.f32.vlgmr.msra.gmra.mrb[2].mxu1 %vm93_vm3, %v1784_v15  ;;  %v70_v53 = vld [vmem:[%s2195_s0 + $0x1b8] sm:$0x1]  ;;  %1643 = vmatpush1.bf16.msk.msra.mxu0 %vm1755_vm2, %v1641_v39  ;;  %v67_v57 = vld [vmem:[%s2195_s0 + $0x1a0] sm:$0x1]  ;;  %v69_v59 = vld [vmem:[%s2195_s0 + $0x1b0] sm:$0x1] }
   0xf   :  { %1649 = vmatpush1.bf16.msk.msra.mxu1 %vm1755_vm2, %v1647_v40  ;;  %554 = vmatprep.mubr.f32.mxu0 %v1727_v3  ;;  %v1668_v61 = vpack.c.bf16 %v70_v53, %v34_v52  ;;  %v36_v62 = vld [vmem:[%s2195_s0 + $0xa8] sm:$0xff]  ;;  %v38_v0 = vld [vmem:[%s2195_s0 + $0xb8] sm:$0xff]  ;;  %v1665_v4 = vpack.c.bf16 %v67_v57, %v31_v56  ;;  %v1671_v5 = vpack.c.bf16 %v69_v59, %v33_v58  ;;  %v35_v6 = vld [vmem:[%s2195_s0 + $0xa0] sm:$0xff] }
  0x10   :  { %625 = vmatprep.mubr.f32.mxu1 %v1727_v3  ;;  %1652 = vmatprep.subr.msk.bf16.mxu0 %vm1755_vm2, %v1650_v47  ;;  %v72_v63 = vld [vmem:[%s2195_s0 + $0x1c8] sm:$0x1]  ;;  %v74_v1 = vld [vmem:[%s2195_s0 + $0x1d8] sm:$0x1]  ;;  %v71_v7 = vld [vmem:[%s2195_s0 + $0x1c0] sm:$0x1] }
  0x11   :  { %1658 = vmatprep.subr.msk.bf16.mxu1 %vm1755_vm2, %v1656_v48  ;;  %1574 = vmatmul.mubr.msk.f32.vlgmr.msra.gmra.mrb[4].mxu0 %vm93_vm3, %v1784_v15  ;;  %v37_v8 = vld [vmem:[%s2195_s0 + $0xb0] sm:$0xff]  ;;  %v1674_v10 = vpack.c.bf16 %v72_v63, %v36_v62  ;;  %v1680_v11 = vpack.c.bf16 %v74_v1, %v38_v0  ;;  %v40_v12 = vld [vmem:[%s2195_s0 + $0xc8] sm:$0xff]  ;;  %v42_v14 = vld [vmem:[%s2195_s0 + $0xd8] sm:$0xff]  ;;  %v1677_v17 = vpack.c.bf16 %v71_v7, %v35_v6 }
  0x12   :  { %1577 = vmatmul.mubr.msk.f32.vlgmr.msra.gmra.mrb[4].mxu1 %vm93_vm3, %v1784_v15  ;;  %1655 = vmatpush1.bf16.msk.msra.mxu0 %vm1755_vm2, %v1653_v54  ;;  %v73_v9 = vld [vmem:[%s2195_s0 + $0x1d0] sm:$0x1]  ;;  %v76_v13 = vld [vmem:[%s2195_s0 + $0x1e8] sm:$0x1]  ;;  %v78_v16 = vld [vmem:[%s2195_s0 + $0x1f8] sm:$0x1] }
  0x13   :  { %1661 = vmatpush1.bf16.msk.msra.mxu1 %vm1755_vm2, %v1659_v55  ;;  %696 = vmatprep.mubr.f32.mxu0 %v1727_v3  ;;  %v1683_v18 = vpack.c.bf16 %v73_v9, %v37_v8  ;;  %v39_v19 = vld [vmem:[%s2195_s0 + $0xc0] sm:$0xff]  ;;  %v41_v21 = vld [vmem:[%s2195_s0 + $0xd0] sm:$0xff]  ;;  %v1686_v23 = vpack.c.bf16 %v76_v13, %v40_v12  ;;  %v1692_v24 = vpack.c.bf16 %v78_v16, %v42_v14  ;;  %v44_v25 = vld [vmem:[%s2195_s0 + $0xe8] sm:$0xff] }
  0x14   :  { %767 = vmatprep.mubr.f32.mxu1 %v1727_v3  ;;  %1664 = vmatprep.subr.msk.bf16.mxu0 %vm1755_vm2, %v1662_v60  ;;  %v75_v20 = vld [vmem:[%s2195_s0 + $0x1e0] sm:$0x1]  ;;  %v77_v22 = vld [vmem:[%s2195_s0 + $0x1f0] sm:$0x1]  ;;  %v80_v26 = vld [vmem:[%s2195_s0 + $0x208] sm:$0x1] }
  0x15   :  { %1670 = vmatprep.subr.msk.bf16.mxu1 %vm1755_vm2, %v1668_v61  ;;  %1580 = vmatmul.mubr.msk.f32.vlgmr.msra.gmra.mrb[6].mxu0 %vm93_vm3, %v1784_v15  ;;  %v46_v27 = vld [vmem:[%s2195_s0 + $0xf8] sm:$0xff]  ;;  %v1689_v29 = vpack.c.bf16 %v75_v20, %v39_v19  ;;  %v1695_v30 = vpack.c.bf16 %v77_v22, %v41_v21  ;;  %v43_v31 = vld [vmem:[%s2195_s0 + $0xe0] sm:$0xff]  ;;  %v45_v33 = vld [vmem:[%s2195_s0 + $0xf0] sm:$0xff]  ;;  %v1698_v35 = vpack.c.bf16 %v80_v26, %v44_v25 }
  0x16   :  { %1583 = vmatmul.mubr.msk.f32.vlgmr.msra.gmra.mrb[6].mxu1 %vm93_vm3, %v1784_v15  ;;  %1667 = vmatpush1.bf16.msk.msra.mxu0 %vm1755_vm2, %v1665_v4  ;;  %v82_v28 = vld [vmem:[%s2195_s0 + $0x218] sm:$0x1]  ;;  %v79_v32 = vld [vmem:[%s2195_s0 + $0x200] sm:$0x1]  ;;  %v81_v34 = vld [vmem:[%s2195_s0 + $0x210] sm:$0x1] }
  0x17   :  { %1673 = vmatpush1.bf16.msk.msra.mxu1 %vm1755_vm2, %v1671_v5  ;;  %838 = vmatprep.mubr.f32.mxu0 %v1727_v3  ;;  %v1704_v36 = vpack.c.bf16 %v82_v28, %v46_v27  ;;  %v48_v37 = vld [vmem:[%s2195_s0 + $0x108] sm:$0xff]  ;;  %v50_v39 = vld [vmem:[%s2195_s0 + $0x118] sm:$0xff]  ;;  %v1701_v41 = vpack.c.bf16 %v79_v32, %v43_v31  ;;  %v1707_v42 = vpack.c.bf16 %v81_v34, %v45_v33  ;;  %v47_v43 = vld [vmem:[%s2195_s0 + $0x100] sm:$0xff] }
  0x18   :  { %909 = vmatprep.mubr.f32.mxu1 %v1727_v3  ;;  %1676 = vmatprep.subr.msk.bf16.mxu0 %vm1755_vm2, %v1674_v10  ;;  %v84_v38 = vld [vmem:[%s2195_s0 + $0x228] sm:$0x1]  ;;  %v86_v40 = vld [vmem:[%s2195_s0 + $0x238] sm:$0x1]  ;;  %v83_v44 = vld [vmem:[%s2195_s0 + $0x220] sm:$0x1] }
  0x19   :  { %1682 = vmatprep.subr.msk.bf16.mxu1 %vm1755_vm2, %v1680_v11  ;;  %1586 = vmatmul.mubr.msk.f32.vlgmr.msra.gmra.mrb[8].mxu0 %vm93_vm3, %v1784_v15  ;;  %v49_v45 = vld [vmem:[%s2195_s0 + $0x110] sm:$0xff]  ;;  %v1710_v47 = vpack.c.bf16 %v84_v38, %v48_v37  ;;  %v1716_v48 = vpack.c.bf16 %v86_v40, %v50_v39  ;;  %v1713_v49 = vpack.c.bf16 %v83_v44, %v47_v43  ;;  %v87_v51 = vld [vmem:[%s2197_s2] sm:$0xff] }
  0x1a   :  { %1589 = vmatmul.mubr.msk.f32.vlgmr.msra.gmra.mrb[8].mxu1 %vm93_vm3, %v1784_v15  ;;  %1679 = vmatpush1.bf16.msk.msra.mxu0 %vm1755_vm2, %v1677_v17  ;;  %v85_v46 = vld [vmem:[%s2195_s0 + $0x230] sm:$0x1] }
  0x1b   :  { %1685 = vmatpush1.bf16.msk.msra.mxu1 %vm1755_vm2, %v1683_v18  ;;  %980 = vmatprep.mubr.f32.mxu0 %v1727_v3  ;;  %v1719_v50 = vpack.c.bf16 %v85_v46, %v49_v45 }
  0x1c   :  { %1051 = vmatprep.mubr.f32.mxu1 %v1727_v3  ;;  %1688 = vmatprep.subr.msk.bf16.mxu0 %vm1755_vm2, %v1686_v23 }
  0x1d   :  { %1694 = vmatprep.subr.msk.bf16.mxu1 %vm1755_vm2, %v1692_v24  ;;  %1592 = vmatmul.mubr.msk.f32.vlgmr.msra.gmra.mrb[10].mxu0 %vm93_vm3, %v1784_v15 }
  0x1e   :  { %1595 = vmatmul.mubr.msk.f32.vlgmr.msra.gmra.mrb[10].mxu1 %vm93_vm3, %v1784_v15  ;;  %1691 = vmatpush1.bf16.msk.msra.mxu0 %vm1755_vm2, %v1689_v29 }
  0x1f   :  { %1697 = vmatpush1.bf16.msk.msra.mxu1 %vm1755_vm2, %v1695_v30  ;;  %1122 = vmatprep.mubr.f32.mxu0 %v1727_v3 }
  0x20   :  { %1193 = vmatprep.mubr.f32.mxu1 %v1727_v3  ;;  %1700 = vmatprep.subr.msk.bf16.mxu0 %vm1755_vm2, %v1698_v35 }
  0x21   :  { %1706 = vmatprep.subr.msk.bf16.mxu1 %vm1755_vm2, %v1704_v36  ;;  %1598 = vmatmul.mubr.msk.f32.vlgmr.msra.gmra.mrb[12].mxu0 %vm93_vm3, %v1784_v15 }
  0x22   :  { %1601 = vmatmul.mubr.msk.f32.vlgmr.msra.gmra.mrb[12].mxu1 %vm93_vm3, %v1784_v15  ;;  %1703 = vmatpush1.bf16.msk.msra.mxu0 %vm1755_vm2, %v1701_v41 }
  0x23   :  { %1709 = vmatpush1.bf16.msk.msra.mxu1 %vm1755_vm2, %v1707_v42  ;;  %1264 = vmatprep.mubr.f32.mxu0 %v1727_v3 }
  0x24   :  { %1335 = vmatprep.mubr.f32.mxu1 %v1727_v3  ;;  %1712 = vmatprep.subr.msk.bf16.mxu0 %vm1755_vm2, %v1710_v47 }
  0x25   :  { %1718 = vmatprep.subr.msk.bf16.mxu1 %vm1755_vm2, %v1716_v48  ;;  %1604 = vmatmul.mubr.msk.f32.vlgmr.msra.gmra.mrb[14].mxu0 %vm93_vm3, %v1784_v15 }
  0x26   :  { %1607 = vmatmul.mubr.msk.f32.vlgmr.msra.gmra.mrb[14].mxu1 %vm93_vm3, %v1784_v15  ;;  %1715 = vmatpush1.bf16.msk.msra.mxu0 %vm1755_vm2, %v1713_v49 }
  0x27   :  { %1721 = vmatpush1.bf16.msk.msra.mxu1 %vm1755_vm2, %v1719_v50  ;;  %1406 = vmatprep.mubr.f32.mxu0 %v1727_v3 }
  0x28   :  { %1477 = vmatprep.mubr.f32.mxu1 %v1727_v3  ;;  %90 = vperm.xlu0 %1725, %v87_v51  }
  0x29   :  { %1610 = vmatmul.mubr.msk.f32.vlgmr.msra.gmra.mrb[16].mxu0 %vm93_vm3, %v1784_v15 }
  0x2a   :  { %1613 = vmatmul.mubr.msk.f32.vlgmr.msra.gmra.mrb[16].mxu1 %vm93_vm3, %v1784_v15 }
  0xa7   :  { %v2103_v56 = vpop.permute.xlu0 %90 }
  0xdc   :  { %v272_v52 = vpop.f32.mrb[0].mxu0 }
  0xdd   :  { %v343_v53 = vpop.f32.mrb[0].mxu1  ;;  %v274_v54 = vpop.f32.mrb[1].mxu0  ;;  %v273_v60 = vadd.f32 %v272_v52, %v2103_v56 }
  0xde   :  { %v345_v55 = vpop.f32.mrb[1].mxu1  ;;  %v344_v3 = vadd.f32 %v343_v53, %v2103_v56  ;;  %v275_v61 = vadd.f32 %v274_v54, %v2103_v56 }
  0xdf   :  { %v346_v62 = vadd.f32 %v345_v55, %v2103_v56  ;;  %v1484_v6 = vmax.f32 %v273_v60, 0.0 }
  0xe0   :  { %v414_v57 = vpop.f32.mrb[2].mxu0  ;;  %v1486_v8 = vmax.f32 %v344_v3, 0.0  ;;  %v1485_v9 = vmax.f32 %v275_v61, 0.0 }
  0xe1   :  { %v485_v2 = vpop.f32.mrb[2].mxu1  ;;  %v416_v58 = vpop.f32.mrb[3].mxu0  ;;  %v415_v10 = vadd.f32 %v414_v57, %v2103_v56  ;;  %v1487_v13 = vmax.f32 %v346_v62, 0.0 }
  0xe2   :  { %v487_v59 = vpop.f32.mrb[3].mxu1  ;;  %v417_v11 = vadd.f32 %v416_v58, %v2103_v56  ;;  %v486_v14 = vadd.f32 %v485_v2, %v2103_v56 }
  0xe3   :  { %v488_v20 = vadd.f32 %v487_v59, %v2103_v56  ;;  %v1488_v30 = vmax.f32 %v415_v10, 0.0 }
  0xe4   :  { %v556_v63 = vpop.f32.mrb[4].mxu0  ;;  %v1489_v31 = vmax.f32 %v417_v11, 0.0  ;;  %v1490_v34 = vmax.f32 %v486_v14, 0.0 }
  0xe5   :  { %v627_v15 = vpop.f32.mrb[4].mxu1  ;;  %v558_v1 = vpop.f32.mrb[5].mxu0  ;;  %v557_v35 = vadd.f32 %v556_v63, %v2103_v56  ;;  %v1491_v48 = vmax.f32 %v488_v20, 0.0 }
  0xe6   :  { %v628_v0 = vadd.f32 %v627_v15, %v2103_v56  ;;  %v629_v4 = vpop.f32.mrb[5].mxu1  ;;  %v559_v5 = vadd.f32 %v558_v1, %v2103_v56 }
  0xe7   :  { %v630_v7 = vadd.f32 %v629_v4, %v2103_v56  ;;  %v1492_v50 = vmax.f32 %v557_v35, 0.0 }
  0xe8   :  { %v1494_v12 = vmax.f32 %v628_v0, 0.0  ;;  %v1493_v16 = vmax.f32 %v559_v5, 0.0  ;;  %v698_v18 = vpop.f32.mrb[6].mxu0 }
  0xe9   :  { %v1495_v17 = vmax.f32 %v630_v7, 0.0  ;;  %v769_v19 = vpop.f32.mrb[6].mxu1  ;;  %v699_v22 = vadd.f32 %v698_v18, %v2103_v56  ;;  %v700_v24 = vpop.f32.mrb[7].mxu0 }
  0xea   :  { %v2116_v21 = vmax.f32 %v1485_v9, %v1494_v12  ;;  %v770_v23 = vadd.f32 %v769_v19, %v2103_v56  ;;  %v771_v25 = vpop.f32.mrb[7].mxu1  ;;  %v2120_v26 = vmax.f32 %v1484_v6, %v1493_v16  ;;  %v701_v28 = vadd.f32 %v700_v24, %v2103_v56 }
  0xeb   :  { %v2122_v27 = vmax.f32 %v1486_v8, %v1495_v17  ;;  %v772_v29 = vadd.f32 %v771_v25, %v2103_v56  ;;  %v1496_v32 = vmax.f32 %v699_v22, 0.0 }
  0xec   :  { %v1498_v33 = vmax.f32 %v770_v23, 0.0  ;;  %v1497_v36 = vmax.f32 %v701_v28, 0.0  ;;  %v840_v38 = vpop.f32.mrb[8].mxu0 }
  0xed   :  { %v1499_v37 = vmax.f32 %v772_v29, 0.0  ;;  %v911_v39 = vpop.f32.mrb[8].mxu1  ;;  %v2127_v40 = vmax.f32 %v1487_v13, %v1496_v32  ;;  %v841_v42 = vadd.f32 %v840_v38, %v2103_v56  ;;  %v842_v43 = vpop.f32.mrb[9].mxu0 }
  0xee   :  { %v2129_v41 = vmax.f32 %v1489_v31, %v1498_v33  ;;  %v913_v44 = vpop.f32.mrb[9].mxu1  ;;  %v2132_v45 = vmax.f32 %v1488_v30, %v1497_v36  ;;  %v843_v47 = vadd.f32 %v842_v43, %v2103_v56  ;;  %v912_v58 = vadd.f32 %v911_v39, %v2103_v56 }
  0xef   :  { %v2134_v46 = vmax.f32 %v1490_v34, %v1499_v37  ;;  %v1500_v49 = vmax.f32 %v841_v42, 0.0  ;;  %v914_v59 = vadd.f32 %v913_v44, %v2103_v56 }
  0xf0   :  { %v1501_v51 = vmax.f32 %v843_v47, 0.0  ;;  %v982_v52 = vpop.f32.mrb[10].mxu0  ;;  %v1502_v5 = vmax.f32 %v912_v58, 0.0 }
  0xf1   :  { %v1053_v53 = vpop.f32.mrb[10].mxu1  ;;  %v2137_v54 = vmax.f32 %v1491_v48, %v1500_v49  ;;  %v984_v55 = vpop.f32.mrb[11].mxu0  ;;  %v983_v60 = vadd.f32 %v982_v52, %v2103_v56  ;;  %v1503_v8 = vmax.f32 %v914_v59, 0.0 }
  0xf2   :  { %v1055_v57 = vpop.f32.mrb[11].mxu1  ;;  %v2139_v2 = vmax.f32 %v1492_v50, %v1501_v51  ;;  %v1054_v62 = vadd.f32 %v1053_v53, %v2103_v56  ;;  %v985_v63 = vadd.f32 %v984_v55, %v2103_v56 }
  0xf3   :  { %v1056_v1 = vadd.f32 %v1055_v57, %v2103_v56  ;;  %v1504_v9 = vmax.f32 %v983_v60, 0.0 }
  0xf4   :  { %v1124_v3 = vpop.f32.mrb[12].mxu0  ;;  %v1506_v14 = vmax.f32 %v1054_v62, 0.0  ;;  %v1505_v16 = vmax.f32 %v985_v63, 0.0 }
  0xf5   :  { %v1195_v61 = vpop.f32.mrb[12].mxu1  ;;  %v1126_v15 = vpop.f32.mrb[13].mxu0  ;;  %v1125_v6 = vadd.f32 %v1124_v3, %v2103_v56  ;;  %v1507_v22 = vmax.f32 %v1056_v1, 0.0 }
  0xf6   :  { %v1197_v0 = vpop.f32.mrb[13].mxu1  ;;  %v1196_v7 = vadd.f32 %v1195_v61, %v2103_v56  ;;  %v1127_v10 = vadd.f32 %v1126_v15, %v2103_v56 }
  0xf7   :  { %v1198_v4 = vadd.f32 %v1197_v0, %v2103_v56  ;;  %v1508_v28 = vmax.f32 %v1125_v6, 0.0 }
  0xf8   :  { %v1266_v12 = vpop.f32.mrb[14].mxu0  ;;  %v1510_v29 = vmax.f32 %v1196_v7, 0.0  ;;  %v1509_v32 = vmax.f32 %v1127_v10, 0.0 }
  0xf9   :  { %v1511_v11 = vmax.f32 %v1198_v4, 0.0  ;;  %v1337_v13 = vpop.f32.mrb[14].mxu1  ;;  %v1267_v17 = vadd.f32 %v1266_v12, %v2103_v56  ;;  %v1268_v19 = vpop.f32.mrb[15].mxu0 }
  0xfa   :  { %v1338_v18 = vadd.f32 %v1337_v13, %v2103_v56  ;;  %v1339_v20 = vpop.f32.mrb[15].mxu1  ;;  %v1269_v24 = vadd.f32 %v1268_v19, %v2103_v56 }
  0xfb   :  { %v1529_v23 = vmax.f32 %v1502_v5, %v1511_v11  ;;  %v1340_v25 = vadd.f32 %v1339_v20, %v2103_v56  ;;  %v1512_v30 = vmax.f32 %v1267_v17, 0.0 }
  0xfc   :  { %v1514_v31 = vmax.f32 %v1338_v18, 0.0  ;;  %v1513_v34 = vmax.f32 %v1269_v24, 0.0  ;;  %v1408_v36 = vpop.f32.mrb[16].mxu0 }
  0xfd   :  { %v1538_v33 = vmax.f32 %v2120_v26, %v1529_v23  ;;  %v1515_v35 = vmax.f32 %v1340_v25, 0.0  ;;  %v1479_v37 = vpop.f32.mrb[16].mxu1  ;;  %v1530_v38 = vmax.f32 %v1503_v8, %v1512_v30  ;;  %v1409_v42 = vadd.f32 %v1408_v36, %v2103_v56  ;;  %v1410_v44 = vpop.f32.mrb[17].mxu0 }
  0xfe   :  { %v1532_v39 = vmax.f32 %v1505_v16, %v1514_v31  ;;  %v1480_v43 = vadd.f32 %v1479_v37, %v2103_v56  ;;  %v1481_v47 = vpop.f32.mrb[17].mxu1  ;;  %v1531_v48 = vmax.f32 %v1504_v9, %v1513_v34  ;;  %v1411_v26 = vadd.f32 %v1410_v44, %v2103_v56 }
  0xff   :  { %1547 = vst [vmem:[%s2198_s3] sm:$0xff] %v1538_v33  ;;  %v1533_v49 = vmax.f32 %v1506_v14, %v1515_v35  ;;  %v1482_v50 = vadd.f32 %v1481_v47, %v2103_v56  ;;  %v1539_v51 = vmax.f32 %v2116_v21, %v1530_v38  ;;  %v1516_v53 = vmax.f32 %v1409_v42, 0.0 }
 0x100   :  { %v1541_v52 = vmax.f32 %v2127_v40, %v1532_v39  ;;  %v1518_v55 = vmax.f32 %v1480_v43, 0.0  ;;  %v1540_v57 = vmax.f32 %v2122_v27, %v1531_v48  ;;  %v1517_v59 = vmax.f32 %v1411_v26, 0.0 }
 0x101   :  { %v1542_v58 = vmax.f32 %v2132_v45, %v1533_v49  ;;  %v1519_v60 = vmax.f32 %v1482_v50, 0.0  ;;  %1548 = vst [vmem:[%s2198_s3 + $0x8] sm:$0xff] %v1539_v51  ;;  %v1534_v56 = vmax.f32 %v1507_v22, %v1516_v53 }
 0x102   :  { %1550 = vst [vmem:[%s2198_s3 + $0x18] sm:$0xff] %v1541_v52  ;;  %v1536_v21 = vmax.f32 %v1509_v32, %v1518_v55  ;;  %1549 = vst [vmem:[%s2198_s3 + $0x10] sm:$0xff] %v1540_v57  ;;  %v1535_v27 = vmax.f32 %v1508_v28, %v1517_v59 }
 0x103   :  { %1551 = vst [vmem:[%s2198_s3 + $0x20] sm:$0xff] %v1542_v58  ;;  %v1537_v40 = vmax.f32 %v1510_v29, %v1519_v60  ;;  %v1543_v45 = vmax.f32 %v2129_v41, %v1534_v56 }
 0x104   :  { %v1545_v3 = vmax.f32 %v2137_v54, %v1536_v21  ;;  %v1544_v61 = vmax.f32 %v2134_v46, %v1535_v27 }
 0x105   :  { %v1546_v62 = vmax.f32 %v2139_v2, %v1537_v40  ;;  %1552 = vst [vmem:[%s2198_s3 + $0x28] sm:$0xff] %v1543_v45 }
 0x106   :  { %1554 = vst [vmem:[%s2198_s3 + $0x38] sm:$0xff] %v1545_v3  ;;  %1553 = vst [vmem:[%s2198_s3 + $0x30] sm:$0xff] %v1544_v61 }
 0x107   :  { %1555 = vst [vmem:[%s2198_s3 + $0x40] sm:$0xff] %v1546_v62 }

// kernel: forward.4
= control target key start
LH: loop header
LB: loop body
LE: loop exit
PB: predicated region body
PF: predicated region fallthrough
CT: control target
= control target key end

     0   :  { %v783_v3 = vmov 0   ;;  %vm230_vm0 = vcmask 588800   ;;  %s1466_s0 = inlined_call_operand.vmem [shape: f32[200,1024], index: 0, kind: input, shape index: {}]   ;;  %s1467_s1 = inlined_call_operand.vmem [shape: f32[16,200], index: 1, kind: input, shape index: {}]   ;;  %s1468_s2 = inlined_call_operand.vmem [shape: f32[16,1], index: 2, kind: input, shape index: {}]   ;;  %s1469_s3 = inlined_call_operand.vmem [shape: f32[16,256], index: 3, kind: output, shape index: {}]  }
   0x1   :  { %v19_v0 = vld [vmem:[%s1466_s0 + $0x8] sm:$0xff]  ;;  %v21_v2 = vld [vmem:[%s1466_s0 + $0x18] sm:$0xff]  ;;  %782 = vset.pattern.permute.xlu0 %v783_v3  ;;  %v18_v6 = vld [vmem:[%s1466_s0] sm:$0xff] }
   0x2   :  { %v27_v1 = vld [vmem:[%s1466_s0 + $0x48] sm:$0xff]  ;;  %v29_v5 = vld [vmem:[%s1466_s0 + $0x58] sm:$0xff]  ;;  %v26_v7 = vld [vmem:[%s1466_s0 + $0x40] sm:$0xff] }
   0x3   :  { %v589_v4 = vpack.c.bf16 %v27_v1, %v19_v0  ;;  %v637_v8 = vpack.c.bf16 %v29_v5, %v21_v2  ;;  %v591_v9 = vpack.c.bf16 %v26_v7, %v18_v6  ;;  %v20_v10 = vld [vmem:[%s1466_s0 + $0x10] sm:$0xff]  ;;  %v35_v12 = vld [vmem:[%s1466_s0 + $0x88] sm:$0xff]  ;;  %v37_v15 = vld [vmem:[%s1466_s0 + $0x98] sm:$0xff] }
   0x4   :  { %v28_v11 = vld [vmem:[%s1466_s0 + $0x50] sm:$0xff]  ;;  %v43_v14 = vld [vmem:[%s1466_s0 + $0xc8] sm:$0xff]  ;;  %v45_v16 = vld [vmem:[%s1466_s0 + $0xd8] sm:$0xff] }
   0x5   :  { %590 = vmatprep.subr.bf16.mxu0 %v589_v4  ;;  %v639_v13 = vpack.c.bf16 %v28_v11, %v20_v10  ;;  %638 = vmatprep.subr.bf16.mxu1 %v637_v8  ;;  %v593_v17 = vpack.c.bf16 %v43_v14, %v35_v12  ;;  %v641_v18 = vpack.c.bf16 %v45_v16, %v37_v15  ;;  %v34_v19 = vld [vmem:[%s1466_s0 + $0x80] sm:$0xff]  ;;  %v36_v21 = vld [vmem:[%s1466_s0 + $0x90] sm:$0xff]  ;;  %v51_v24 = vld [vmem:[%s1466_s0 + $0x108] sm:$0xff] }
   0x6   :  { %592 = vmatpush1.bf16.msra.mxu0 %v591_v9  ;;  %v42_v20 = vld [vmem:[%s1466_s0 + $0xc0] sm:$0xff]  ;;  %v44_v23 = vld [vmem:[%s1466_s0 + $0xd0] sm:$0xff]  ;;  %v59_v25 = vld [vmem:[%s1466_s0 + $0x148] sm:$0xff] }
   0x7   :  { %640 = vmatpush1.bf16.msra.mxu1 %v639_v13  ;;  %v595_v22 = vpack.c.bf16 %v42_v20, %v34_v19  ;;  %594 = vmatprep.subr.bf16.mxu0 %v593_v17  ;;  %v643_v26 = vpack.c.bf16 %v44_v23, %v36_v21  ;;  %v597_v27 = vpack.c.bf16 %v59_v25, %v51_v24  ;;  %v53_v28 = vld [vmem:[%s1466_s0 + $0x118] sm:$0xff]  ;;  %v50_v30 = vld [vmem:[%s1466_s0 + $0x100] sm:$0xff]  ;;  %v52_v33 = vld [vmem:[%s1466_s0 + $0x110] sm:$0xff] }
   0x8   :  { %642 = vmatprep.subr.bf16.mxu1 %v641_v18  ;;  %v61_v29 = vld [vmem:[%s1466_s0 + $0x158] sm:$0xff]  ;;  %v58_v32 = vld [vmem:[%s1466_s0 + $0x140] sm:$0xff]  ;;  %v60_v34 = vld [vmem:[%s1466_s0 + $0x150] sm:$0xff] }
   0x9   :  { %v645_v31 = vpack.c.bf16 %v61_v29, %v53_v28  ;;  %v599_v35 = vpack.c.bf16 %v58_v32, %v50_v30  ;;  %v67_v36 = vld [vmem:[%s1466_s0 + $0x188] sm:$0xff]  ;;  %v69_v38 = vld [vmem:[%s1466_s0 + $0x198] sm:$0xff]  ;;  %v647_v39 = vpack.c.bf16 %v60_v34, %v52_v33  ;;  %v66_v42 = vld [vmem:[%s1466_s0 + $0x180] sm:$0xff] }
   0xa   :  { %596 = vmatpush1.bf16.msra.mxu0 %v595_v22  ;;  %v75_v37 = vld [vmem:[%s1466_s0 + $0x1c8] sm:$0xff]  ;;  %v77_v41 = vld [vmem:[%s1466_s0 + $0x1d8] sm:$0xff]  ;;  %v74_v43 = vld [vmem:[%s1466_s0 + $0x1c0] sm:$0xff] }
   0xb   :  { %644 = vmatpush1.bf16.msra.mxu1 %v643_v26  ;;  %598 = vmatprep.subr.bf16.mxu0 %v597_v27  ;;  %v601_v40 = vpack.c.bf16 %v75_v37, %v67_v36  ;;  %v649_v44 = vpack.c.bf16 %v77_v41, %v69_v38  ;;  %v68_v45 = vld [vmem:[%s1466_s0 + $0x190] sm:$0xff]  ;;  %v83_v47 = vld [vmem:[%s1466_s0 + $0x208] sm:$0xff]  ;;  %v85_v49 = vld [vmem:[%s1466_s0 + $0x218] sm:$0xff]  ;;  %v603_v51 = vpack.c.bf16 %v74_v43, %v66_v42 }
   0xc   :  { %646 = vmatprep.subr.bf16.mxu1 %v645_v31  ;;  %v76_v46 = vld [vmem:[%s1466_s0 + $0x1d0] sm:$0xff]  ;;  %v91_v48 = vld [vmem:[%s1466_s0 + $0x248] sm:$0xff]  ;;  %v93_v50 = vld [vmem:[%s1466_s0 + $0x258] sm:$0xff] }
   0xd   :  { %v651_v52 = vpack.c.bf16 %v76_v46, %v68_v45  ;;  %v605_v53 = vpack.c.bf16 %v91_v48, %v83_v47  ;;  %v82_v54 = vld [vmem:[%s1466_s0 + $0x200] sm:$0xff]  ;;  %v84_v56 = vld [vmem:[%s1466_s0 + $0x210] sm:$0xff]  ;;  %v653_v57 = vpack.c.bf16 %v93_v50, %v85_v49  ;;  %v99_v59 = vld [vmem:[%s1466_s0 + $0x288] sm:$0xff] }
   0xe   :  { %600 = vmatpush1.bf16.msra.mxu0 %v599_v35  ;;  %v90_v55 = vld [vmem:[%s1466_s0 + $0x240] sm:$0xff]  ;;  %v92_v58 = vld [vmem:[%s1466_s0 + $0x250] sm:$0xff]  ;;  %v107_v60 = vld [vmem:[%s1466_s0 + $0x2c8] sm:$0xff] }
   0xf   :  { %648 = vmatpush1.bf16.msra.mxu1 %v647_v39  ;;  %602 = vmatprep.subr.bf16.mxu0 %v601_v40  ;;  %v101_v61 = vld [vmem:[%s1466_s0 + $0x298] sm:$0xff]  ;;  %v607_v63 = vpack.c.bf16 %v90_v55, %v82_v54  ;;  %v655_v0 = vpack.c.bf16 %v92_v58, %v84_v56  ;;  %v609_v1 = vpack.c.bf16 %v107_v60, %v99_v59  ;;  %v98_v2 = vld [vmem:[%s1466_s0 + $0x280] sm:$0xff]  ;;  %v100_v4 = vld [vmem:[%s1466_s0 + $0x290] sm:$0xff] }
  0x10   :  { %650 = vmatprep.subr.bf16.mxu1 %v649_v44  ;;  %v109_v62 = vld [vmem:[%s1466_s0 + $0x2d8] sm:$0xff]  ;;  %v106_v3 = vld [vmem:[%s1466_s0 + $0x2c0] sm:$0xff]  ;;  %v108_v6 = vld [vmem:[%s1466_s0 + $0x2d0] sm:$0xff] }
  0x11   :  { %v657_v5 = vpack.c.bf16 %v109_v62, %v101_v61  ;;  %v115_v7 = vld [vmem:[%s1466_s0 + $0x308] sm:$0xff]  ;;  %v117_v9 = vld [vmem:[%s1466_s0 + $0x318] sm:$0xff]  ;;  %v611_v11 = vpack.c.bf16 %v106_v3, %v98_v2  ;;  %v659_v12 = vpack.c.bf16 %v108_v6, %v100_v4  ;;  %v114_v14 = vld [vmem:[%s1466_s0 + $0x300] sm:$0xff] }
  0x12   :  { %604 = vmatpush1.bf16.msra.mxu0 %v603_v51  ;;  %v123_v8 = vld [vmem:[%s1466_s0 + $0x348] sm:$0xff]  ;;  %v125_v10 = vld [vmem:[%s1466_s0 + $0x358] sm:$0xff]  ;;  %v122_v15 = vld [vmem:[%s1466_s0 + $0x340] sm:$0xff] }
  0x13   :  { %652 = vmatpush1.bf16.msra.mxu1 %v651_v52  ;;  %606 = vmatprep.subr.bf16.mxu0 %v605_v53  ;;  %v613_v13 = vpack.c.bf16 %v123_v8, %v115_v7  ;;  %v116_v16 = vld [vmem:[%s1466_s0 + $0x310] sm:$0xff]  ;;  %v661_v17 = vpack.c.bf16 %v125_v10, %v117_v9  ;;  %v131_v19 = vld [vmem:[%s1466_s0 + $0x388] sm:$0xff]  ;;  %v133_v21 = vld [vmem:[%s1466_s0 + $0x398] sm:$0xff]  ;;  %v615_v23 = vpack.c.bf16 %v122_v15, %v114_v14 }
  0x14   :  { %654 = vmatprep.subr.bf16.mxu1 %v653_v57  ;;  %v124_v18 = vld [vmem:[%s1466_s0 + $0x350] sm:$0xff]  ;;  %v139_v20 = vld [vmem:[%s1466_s0 + $0x3c8] sm:$0xff]  ;;  %v141_v22 = vld [vmem:[%s1466_s0 + $0x3d8] sm:$0xff] }
  0x15   :  { %v663_v24 = vpack.c.bf16 %v124_v18, %v116_v16  ;;  %v617_v25 = vpack.c.bf16 %v139_v20, %v131_v19  ;;  %v130_v26 = vld [vmem:[%s1466_s0 + $0x380] sm:$0xff]  ;;  %v132_v28 = vld [vmem:[%s1466_s0 + $0x390] sm:$0xff]  ;;  %v665_v29 = vpack.c.bf16 %v141_v22, %v133_v21  ;;  %v147_v31 = vld [vmem:[%s1466_s0 + $0x408] sm:$0xff] }
  0x16   :  { %608 = vmatpush1.bf16.msra.mxu0 %v607_v63  ;;  %v138_v27 = vld [vmem:[%s1466_s0 + $0x3c0] sm:$0xff]  ;;  %v140_v30 = vld [vmem:[%s1466_s0 + $0x3d0] sm:$0xff]  ;;  %v155_v32 = vld [vmem:[%s1466_s0 + $0x448] sm:$0xff] }
  0x17   :  { %656 = vmatpush1.bf16.msra.mxu1 %v655_v0  ;;  %610 = vmatprep.subr.bf16.mxu0 %v609_v1  ;;  %v149_v33 = vld [vmem:[%s1466_s0 + $0x418] sm:$0xff]  ;;  %v619_v35 = vpack.c.bf16 %v138_v27, %v130_v26  ;;  %v667_v36 = vpack.c.bf16 %v140_v30, %v132_v28  ;;  %v621_v37 = vpack.c.bf16 %v155_v32, %v147_v31  ;;  %v146_v38 = vld [vmem:[%s1466_s0 + $0x400] sm:$0xff]  ;;  %v148_v40 = vld [vmem:[%s1466_s0 + $0x410] sm:$0xff] }
  0x18   :  { %658 = vmatprep.subr.bf16.mxu1 %v657_v5  ;;  %v157_v34 = vld [vmem:[%s1466_s0 + $0x458] sm:$0xff]  ;;  %v154_v39 = vld [vmem:[%s1466_s0 + $0x440] sm:$0xff]  ;;  %v156_v42 = vld [vmem:[%s1466_s0 + $0x450] sm:$0xff] }
  0x19   :  { %v669_v41 = vpack.c.bf16 %v157_v34, %v149_v33  ;;  %v163_v43 = vld [vmem:[%s1466_s0 + $0x488] sm:$0xff]  ;;  %v165_v45 = vld [vmem:[%s1466_s0 + $0x498] sm:$0xff]  ;;  %v623_v47 = vpack.c.bf16 %v154_v39, %v146_v38  ;;  %v162_v48 = vld [vmem:[%s1466_s0 + $0x480] sm:$0xff]  ;;  %v671_v49 = vpack.c.bf16 %v156_v42, %v148_v40 }
  0x1a   :  { %612 = vmatpush1.bf16.msra.mxu0 %v611_v11  ;;  %v171_v44 = vld [vmem:[%s1466_s0 + $0x4c8] sm:$0xff]  ;;  %v173_v46 = vld [vmem:[%s1466_s0 + $0x4d8] sm:$0xff]  ;;  %v170_v51 = vld [vmem:[%s1466_s0 + $0x4c0] sm:$0xff] }
  0x1b   :  { %660 = vmatpush1.bf16.msra.mxu1 %v659_v12  ;;  %614 = vmatprep.subr.bf16.mxu0 %v613_v13  ;;  %v625_v50 = vpack.c.bf16 %v171_v44, %v163_v43  ;;  %v164_v52 = vld [vmem:[%s1466_s0 + $0x490] sm:$0xff]  ;;  %v1044_v53 = vld [vmem:[%s1467_s1 + $0x8] sm:$0xff]  ;;  %v673_v54 = vpack.c.bf16 %v173_v46, %v165_v45  ;;  %v181_v58 = vld [vmem:[%s1466_s0 + $0x518] sm:$0xff]  ;;  %v627_v60 = vpack.c.bf16 %v170_v51, %v162_v48 }
  0x1c   :  { %662 = vmatprep.subr.bf16.mxu1 %v661_v17  ;;  %v172_v55 = vld [vmem:[%s1466_s0 + $0x4d0] sm:$0xff]  ;;  %v179_v56 = vld [vmem:[%s1466_s0 + $0x508] sm:$0xff]  ;;  %581 = vmatprep.mubr.msk.f32.mxu0 %vm230_vm0, %v1044_v53  ;;  %v189_v59 = vld [vmem:[%s1466_s0 + $0x558] sm:$0xff] }
  0x1d   :  { %v187_v57 = vld [vmem:[%s1466_s0 + $0x548] sm:$0xff]  ;;  %583 = vmatprep.mubr.msk.f32.mxu1 %vm230_vm0, %v1044_v53  ;;  %v675_v61 = vpack.c.bf16 %v172_v55, %v164_v52  ;;  %v178_v63 = vld [vmem:[%s1466_s0 + $0x500] sm:$0xff]  ;;  %v180_v1 = vld [vmem:[%s1466_s0 + $0x510] sm:$0xff]  ;;  %v677_v2 = vpack.c.bf16 %v189_v59, %v181_v58 }
  0x1e   :  { %616 = vmatpush1.bf16.msra.mxu0 %v615_v23  ;;  %v629_v62 = vpack.c.bf16 %v187_v57, %v179_v56  ;;  %v186_v0 = vld [vmem:[%s1466_s0 + $0x540] sm:$0xff]  ;;  %v188_v3 = vld [vmem:[%s1466_s0 + $0x550] sm:$0xff]  ;;  %v195_v4 = vld [vmem:[%s1466_s0 + $0x588] sm:$0xff] }
  0x1f   :  { %664 = vmatpush1.bf16.msra.mxu1 %v663_v24  ;;  %618 = vmatprep.subr.bf16.mxu0 %v617_v25  ;;  %v203_v5 = vld [vmem:[%s1466_s0 + $0x5c8] sm:$0xff]  ;;  %v197_v6 = vld [vmem:[%s1466_s0 + $0x598] sm:$0xff]  ;;  %v631_v8 = vpack.c.bf16 %v186_v0, %v178_v63  ;;  %v679_v9 = vpack.c.bf16 %v188_v3, %v180_v1  ;;  %v194_v11 = vld [vmem:[%s1466_s0 + $0x580] sm:$0xff] }
  0x20   :  { %666 = vmatprep.subr.bf16.mxu1 %v665_v29  ;;  %v205_v7 = vld [vmem:[%s1466_s0 + $0x5d8] sm:$0xff]  ;;  %v633_v10 = vpack.c.bf16 %v203_v5, %v195_v4  ;;  %v202_v12 = vld [vmem:[%s1466_s0 + $0x5c0] sm:$0xff]  ;;  %v196_v14 = vld [vmem:[%s1466_s0 + $0x590] sm:$0xff] }
  0x21   :  { %v681_v13 = vpack.c.bf16 %v205_v7, %v197_v6  ;;  %v204_v15 = vld [vmem:[%s1466_s0 + $0x5d0] sm:$0xff]  ;;  %v635_v16 = vpack.c.bf16 %v202_v12, %v194_v11  ;;  %v211_v18 = vld [vmem:[%s1466_s0 + $0x608] sm:$0xff]  ;;  %v213_v19 = vld [vmem:[%s1466_s0 + $0x618] sm:$0xff] }
  0x22   :  { %620 = vmatpush1.bf16.msra.mxu0 %v619_v35  ;;  %v683_v17 = vpack.c.bf16 %v204_v15, %v196_v14  ;;  %v23_v20 = vld [vmem:[%s1466_s0 + $0x28] sm:$0xff]  ;;  %v210_v21 = vld [vmem:[%s1466_s0 + $0x600] sm:$0xff]  ;;  %v25_v23 = vld [vmem:[%s1466_s0 + $0x38] sm:$0xff] }
  0x23   :  { %668 = vmatpush1.bf16.msra.mxu1 %v667_v36  ;;  %622 = vmatprep.subr.bf16.mxu0 %v621_v37  ;;  %v31_v22 = vld [vmem:[%s1466_s0 + $0x68] sm:$0xff]  ;;  %v33_v24 = vld [vmem:[%s1466_s0 + $0x78] sm:$0xff]  ;;  %v212_v25 = vld [vmem:[%s1466_s0 + $0x610] sm:$0xff] }
  0x24   :  { %670 = vmatprep.subr.bf16.mxu1 %v669_v41  ;;  %v22_v26 = vld [vmem:[%s1466_s0 + $0x20] sm:$0xff]  ;;  %v24_v28 = vld [vmem:[%s1466_s0 + $0x30] sm:$0xff]  ;;  %v39_v30 = vld [vmem:[%s1466_s0 + $0xa8] sm:$0xff]  ;;  %v685_v33 = vpack.c.bf16 %v31_v22, %v23_v20  ;;  %v733_v36 = vpack.c.bf16 %v33_v24, %v25_v23 }
  0x25   :  { %v30_v27 = vld [vmem:[%s1466_s0 + $0x60] sm:$0xff]  ;;  %v32_v29 = vld [vmem:[%s1466_s0 + $0x70] sm:$0xff]  ;;  %v47_v31 = vld [vmem:[%s1466_s0 + $0xe8] sm:$0xff] }
  0x26   :  { %624 = vmatpush1.bf16.msra.mxu0 %v623_v47  ;;  %v1146_v32 = vld [vmem:[%s1467_s1] sm:$0xff]  ;;  %v41_v34 = vld [vmem:[%s1466_s0 + $0xb8] sm:$0xff]  ;;  %v687_v37 = vpack.c.bf16 %v30_v27, %v22_v26  ;;  %v735_v38 = vpack.c.bf16 %v32_v29, %v24_v28  ;;  %v689_v39 = vpack.c.bf16 %v47_v31, %v39_v30  ;;  %v40_v42 = vld [vmem:[%s1466_s0 + $0xb0] sm:$0xff] }
  0x27   :  { %672 = vmatpush1.bf16.msra.mxu1 %v671_v49  ;;  %626 = vmatprep.subr.bf16.mxu0 %v625_v50  ;;  %v49_v35 = vld [vmem:[%s1466_s0 + $0xf8] sm:$0xff]  ;;  %v38_v40 = vld [vmem:[%s1466_s0 + $0xa0] sm:$0xff]  ;;  %v48_v44 = vld [vmem:[%s1466_s0 + $0xf0] sm:$0xff] }
  0x28   :  { %674 = vmatprep.subr.bf16.mxu1 %v673_v54  ;;  %v46_v41 = vld [vmem:[%s1466_s0 + $0xe0] sm:$0xff]  ;;  %v737_v43 = vpack.c.bf16 %v49_v35, %v41_v34  ;;  %v55_v45 = vld [vmem:[%s1466_s0 + $0x128] sm:$0xff]  ;;  %v57_v47 = vld [vmem:[%s1466_s0 + $0x138] sm:$0xff]  ;;  %v739_v50 = vpack.c.bf16 %v48_v44, %v40_v42 }
  0x29   :  { %v63_v46 = vld [vmem:[%s1466_s0 + $0x168] sm:$0xff]  ;;  %v65_v48 = vld [vmem:[%s1466_s0 + $0x178] sm:$0xff]  ;;  %v691_v49 = vpack.c.bf16 %v46_v41, %v38_v40  ;;  %v54_v52 = vld [vmem:[%s1466_s0 + $0x120] sm:$0xff] }
  0x2a   :  { %628 = vmatpush1.bf16.msra.mxu0 %v627_v60  ;;  %v693_v51 = vpack.c.bf16 %v63_v46, %v55_v45  ;;  %v62_v54 = vld [vmem:[%s1466_s0 + $0x160] sm:$0xff]  ;;  %v56_v55 = vld [vmem:[%s1466_s0 + $0x130] sm:$0xff]  ;;  %v741_v56 = vpack.c.bf16 %v65_v48, %v57_v47  ;;  %v71_v58 = vld [vmem:[%s1466_s0 + $0x1a8] sm:$0xff] }
  0x2b   :  { %676 = vmatpush1.bf16.msra.mxu1 %v675_v61  ;;  %630 = vmatprep.subr.bf16.mxu0 %v629_v62  ;;  %v64_v57 = vld [vmem:[%s1466_s0 + $0x170] sm:$0xff]  ;;  %v79_v59 = vld [vmem:[%s1466_s0 + $0x1e8] sm:$0xff]  ;;  %v73_v60 = vld [vmem:[%s1466_s0 + $0x1b8] sm:$0xff]  ;;  %v695_v62 = vpack.c.bf16 %v62_v54, %v54_v52 }
  0x2c   :  { %678 = vmatprep.subr.bf16.mxu1 %v677_v2  ;;  %v81_v61 = vld [vmem:[%s1466_s0 + $0x1f8] sm:$0xff]  ;;  %v743_v63 = vpack.c.bf16 %v64_v57, %v56_v55  ;;  %v697_v0 = vpack.c.bf16 %v79_v59, %v71_v58  ;;  %v70_v1 = vld [vmem:[%s1466_s0 + $0x1a0] sm:$0xff]  ;;  %v72_v3 = vld [vmem:[%s1466_s0 + $0x1b0] sm:$0xff] }
  0x2d   :  { %v78_v2 = vld [vmem:[%s1466_s0 + $0x1e0] sm:$0xff]  ;;  %v745_v4 = vpack.c.bf16 %v81_v61, %v73_v60  ;;  %v80_v5 = vld [vmem:[%s1466_s0 + $0x1f0] sm:$0xff]  ;;  %v87_v6 = vld [vmem:[%s1466_s0 + $0x228] sm:$0xff] }
  0x2e   :  { %632 = vmatpush1.bf16.msra.mxu0 %v631_v8  ;;  %v95_v7 = vld [vmem:[%s1466_s0 + $0x268] sm:$0xff]  ;;  %v89_v8 = vld [vmem:[%s1466_s0 + $0x238] sm:$0xff]  ;;  %v86_v11 = vld [vmem:[%s1466_s0 + $0x220] sm:$0xff] }
  0x2f   :  { %680 = vmatpush1.bf16.msra.mxu1 %v679_v9  ;;  %634 = vmatprep.subr.bf16.mxu0 %v633_v10  ;;  %v97_v9 = vld [vmem:[%s1466_s0 + $0x278] sm:$0xff]  ;;  %v699_v10 = vpack.c.bf16 %v78_v2, %v70_v1  ;;  %v701_v14 = vpack.c.bf16 %v95_v7, %v87_v6  ;;  %v94_v15 = vld [vmem:[%s1466_s0 + $0x260] sm:$0xff]  ;;  %v111_v20 = vld [vmem:[%s1466_s0 + $0x2e8] sm:$0xff] }
  0x30   :  { %682 = vmatprep.subr.bf16.mxu1 %v681_v13  ;;  %v1234_v12 = vld [vmem:[%s1467_s1 + $0x18] sm:$0xff]  ;;  %v747_v13 = vpack.c.bf16 %v80_v5, %v72_v3  ;;  %v703_v24 = vpack.c.bf16 %v94_v15, %v86_v11  ;;  %v110_v28 = vld [vmem:[%s1466_s0 + $0x2e0] sm:$0xff]  ;;  %v104_v29 = vld [vmem:[%s1466_s0 + $0x2b0] sm:$0xff] }
  0x31   :  { %v105_v22 = vld [vmem:[%s1466_s0 + $0x2b8] sm:$0xff]  ;;  %v218_v30 = vld [vmem:[%s1468_s2] sm:$0xff]  ;;  %v119_v34 = vld [vmem:[%s1466_s0 + $0x328] sm:$0xff] }
  0x32   :  { %636 = vmatpush1.bf16.msra.mxu0 %v635_v16  ;;  %v88_v16 = vld [vmem:[%s1466_s0 + $0x230] sm:$0xff]  ;;  %v113_v23 = vld [vmem:[%s1466_s0 + $0x2f8] sm:$0xff]  ;;  %v127_v35 = vld [vmem:[%s1466_s0 + $0x368] sm:$0xff]  ;;  %222 = vperm.xlu0 %782, %v218_v30  }
  0x33   :  { %684 = vmatpush1.bf16.msra.mxu1 %v683_v17  ;;  %285 = vmatprep.subr.mxu0 %v211_v18  ;;  %v96_v17 = vld [vmem:[%s1466_s0 + $0x270] sm:$0xff]  ;;  %v749_v18 = vpack.c.bf16 %v97_v9, %v89_v8  ;;  %v753_v31 = vpack.c.bf16 %v113_v23, %v105_v22  ;;  %v709_v41 = vpack.c.bf16 %v127_v35, %v119_v34  ;;  %v118_v42 = vld [vmem:[%s1466_s0 + $0x320] sm:$0xff]  ;;  %v135_v46 = vld [vmem:[%s1466_s0 + $0x3a8] sm:$0xff] }
  0x34   :  { %362 = vmatprep.subr.mxu1 %v213_v19  ;;  %v103_v19 = vld [vmem:[%s1466_s0 + $0x2a8] sm:$0xff]  ;;  %v751_v26 = vpack.c.bf16 %v96_v17, %v88_v16  ;;  %v128_v45 = vld [vmem:[%s1466_s0 + $0x370] sm:$0xff]  ;;  %v137_v48 = vld [vmem:[%s1466_s0 + $0x3b8] sm:$0xff] }
  0x35   :  { %v705_v27 = vpack.c.bf16 %v111_v20, %v103_v19  ;;  %v143_v47 = vld [vmem:[%s1466_s0 + $0x3e8] sm:$0xff]  ;;  %v134_v54 = vld [vmem:[%s1466_s0 + $0x3a0] sm:$0xff]  ;;  %v144_v58 = vld [vmem:[%s1466_s0 + $0x3f0] sm:$0xff] }
  0x36   :  { %286 = vmatpush1.msra.mxu0 %v210_v21  ;;  %v1256_v21 = vld [vmem:[%s1467_s1 + $0x10] sm:$0xff]  ;;  %v713_v52 = vpack.c.bf16 %v143_v47, %v135_v46  ;;  %v142_v55 = vld [vmem:[%s1466_s0 + $0x3e0] sm:$0xff]  ;;  %v151_v59 = vld [vmem:[%s1466_s0 + $0x428] sm:$0xff] }
  0x37   :  { %363 = vmatpush1.msra.mxu1 %v212_v25  ;;  %302 = vmatmul.mubr.f32.vlgmr.msra.gmra.mrb[0].mxu0 %v1146_v32  ;;  %v102_v25 = vld [vmem:[%s1466_s0 + $0x2a0] sm:$0xff]  ;;  %v159_v60 = vld [vmem:[%s1466_s0 + $0x468] sm:$0xff]  ;;  %v153_v61 = vld [vmem:[%s1466_s0 + $0x438] sm:$0xff] }
  0x38   :  { %379 = vmatmul.mubr.f32.vlgmr.msra.gmra.mrb[0].mxu1 %v1146_v32  ;;  %686 = vmatprep.subr.bf16.mxu0 %v685_v33  ;;  %v112_v33 = vld [vmem:[%s1466_s0 + $0x2f0] sm:$0xff]  ;;  %v717_v1 = vpack.c.bf16 %v159_v60, %v151_v59  ;;  %v150_v2 = vld [vmem:[%s1466_s0 + $0x420] sm:$0xff]  ;;  %v167_v7 = vld [vmem:[%s1466_s0 + $0x4a8] sm:$0xff] }
  0x39   :  { %734 = vmatprep.subr.bf16.mxu1 %v733_v36  ;;  %688 = vmatpush1.bf16.msra.mxu0 %v687_v37  ;;  %v121_v36 = vld [vmem:[%s1466_s0 + $0x338] sm:$0xff]  ;;  %v755_v40 = vpack.c.bf16 %v112_v33, %v104_v29  ;;  %v158_v3 = vld [vmem:[%s1466_s0 + $0x460] sm:$0xff]  ;;  %v160_v6 = vld [vmem:[%s1466_s0 + $0x470] sm:$0xff] }
  0x3a   :  { %736 = vmatpush1.bf16.msra.mxu1 %v735_v38  ;;  %690 = vmatprep.subr.bf16.mxu0 %v689_v39  ;;  %v129_v37 = vld [vmem:[%s1466_s0 + $0x378] sm:$0xff]  ;;  %v707_v38 = vpack.c.bf16 %v110_v28, %v102_v25  ;;  %v219_v39 = vld [vmem:[%s1468_s2 + $0x8] sm:$0xff]  ;;  %v719_v11 = vpack.c.bf16 %v158_v3, %v150_v2  ;;  %v166_v15 = vld [vmem:[%s1466_s0 + $0x4a0] sm:$0xff] }
  0x3b   :  { %738 = vmatprep.subr.bf16.mxu1 %v737_v43  ;;  %582 = vmatprep.mubr.msk.f32.mxu0 %vm230_vm0, %v1234_v12  ;;  %v126_v43 = vld [vmem:[%s1466_s0 + $0x360] sm:$0xff]  ;;  %v757_v44 = vpack.c.bf16 %v129_v37, %v121_v36  ;;  %v175_v8 = vld [vmem:[%s1466_s0 + $0x4e8] sm:$0xff]  ;;  %v169_v9 = vld [vmem:[%s1466_s0 + $0x4b8] sm:$0xff] }
  0x3c   :  { %584 = vmatprep.mubr.msk.f32.mxu1 %vm230_vm0, %v1234_v12  ;;  %308 = vmatmul.mubr.f32.gmra.mrb[2].mxu0 %v1256_v21  ;;  %v174_v16 = vld [vmem:[%s1466_s0 + $0x4e0] sm:$0xff]  ;;  %v168_v17 = vld [vmem:[%s1466_s0 + $0x4b0] sm:$0xff]  ;;  %v183_v20 = vld [vmem:[%s1466_s0 + $0x528] sm:$0xff] }
  0x3d   :  { %692 = vmatpush1.bf16.msra.mxu0 %v691_v49  ;;  %385 = vmatmul.mubr.f32.gmra.mrb[2].mxu1 %v1256_v21  ;;  %v145_v49 = vld [vmem:[%s1466_s0 + $0x3f8] sm:$0xff]  ;;  %v176_v19 = vld [vmem:[%s1466_s0 + $0x4f0] sm:$0xff]  ;;  %v191_v22 = vld [vmem:[%s1466_s0 + $0x568] sm:$0xff]  ;;  %v723_v25 = vpack.c.bf16 %v174_v16, %v166_v15 }
  0x3e   :  { %740 = vmatpush1.bf16.msra.mxu1 %v739_v50  ;;  %694 = vmatprep.subr.bf16.mxu0 %v693_v51  ;;  %v711_v50 = vpack.c.bf16 %v126_v43, %v118_v42  ;;  %v761_v57 = vpack.c.bf16 %v145_v49, %v137_v48  ;;  %v185_v23 = vld [vmem:[%s1466_s0 + $0x538] sm:$0xff]  ;;  %v182_v28 = vld [vmem:[%s1466_s0 + $0x520] sm:$0xff]  ;;  %v184_v30 = vld [vmem:[%s1466_s0 + $0x530] sm:$0xff] }
  0x3f   :  { %742 = vmatprep.subr.bf16.mxu1 %v741_v56  ;;  %585 = vmatprep.mubr.msk.f32.mxu0 %vm230_vm0, %v1044_v53  ;;  %v136_v56 = vld [vmem:[%s1466_s0 + $0x3b0] sm:$0xff]  ;;  %v190_v29 = vld [vmem:[%s1466_s0 + $0x560] sm:$0xff]  ;;  %v199_v34 = vld [vmem:[%s1466_s0 + $0x5a8] sm:$0xff] }
  0x40   :  { %587 = vmatprep.mubr.msk.f32.mxu1 %vm230_vm0, %v1044_v53  ;;  %v120_v53 = vld [vmem:[%s1466_s0 + $0x330] sm:$0xff]  ;;  %227 = vperm.xlu0 %782, %v219_v39   ;;  %v207_v35 = vld [vmem:[%s1466_s0 + $0x5e8] sm:$0xff]  ;;  %v201_v36 = vld [vmem:[%s1466_s0 + $0x5b8] sm:$0xff] }
  0x41   :  { %696 = vmatpush1.bf16.msra.mxu0 %v695_v62  ;;  %v759_v51 = vpack.c.bf16 %v128_v45, %v120_v53  ;;  %v161_v62 = vld [vmem:[%s1466_s0 + $0x478] sm:$0xff]  ;;  %v192_v33 = vld [vmem:[%s1466_s0 + $0x570] sm:$0xff]  ;;  %v206_v42 = vld [vmem:[%s1466_s0 + $0x5e0] sm:$0xff] }
  0x42   :  { %744 = vmatpush1.bf16.msra.mxu1 %v743_v63  ;;  %698 = vmatprep.subr.bf16.mxu0 %v697_v0  ;;  %v715_v63 = vpack.c.bf16 %v142_v55, %v134_v54  ;;  %v763_v0 = vpack.c.bf16 %v144_v58, %v136_v56  ;;  %v765_v5 = vpack.c.bf16 %v161_v62, %v153_v61  ;;  %v209_v37 = vld [vmem:[%s1466_s0 + $0x5f8] sm:$0xff]  ;;  %v200_v53 = vld [vmem:[%s1466_s0 + $0x5b0] sm:$0xff]  ;;  %v215_v47 = vld [vmem:[%s1466_s0 + $0x628] sm:$0xff] }
  0x43   :  { %746 = vmatprep.subr.bf16.mxu1 %v745_v4  ;;  %v152_v4 = vld [vmem:[%s1466_s0 + $0x430] sm:$0xff]  ;;  %v775_v39 = vpack.c.bf16 %v192_v33, %v184_v30  ;;  %v777_v43 = vpack.c.bf16 %v209_v37, %v201_v36  ;;  %v217_v48 = vld [vmem:[%s1466_s0 + $0x638] sm:$0xff]  ;;  %v214_v49 = vld [vmem:[%s1466_s0 + $0x620] sm:$0xff] }
  0x45   :  { %700 = vmatpush1.bf16.msra.mxu0 %v699_v10  ;;  %v177_v10 = vld [vmem:[%s1466_s0 + $0x4f8] sm:$0xff] }
  0x46   :  { %748 = vmatpush1.bf16.msra.mxu1 %v747_v13  ;;  %702 = vmatprep.subr.bf16.mxu0 %v701_v14  ;;  %v767_v13 = vpack.c.bf16 %v160_v6, %v152_v4  ;;  %v721_v14 = vpack.c.bf16 %v175_v8, %v167_v7 }
  0x47   :  { %750 = vmatprep.subr.bf16.mxu1 %v749_v18  ;;  %v769_v18 = vpack.c.bf16 %v177_v10, %v169_v9 }
  0x49   :  { %704 = vmatpush1.bf16.msra.mxu0 %v703_v24  ;;  %v193_v24 = vld [vmem:[%s1466_s0 + $0x578] sm:$0xff] }
  0x4a   :  { %752 = vmatpush1.bf16.msra.mxu1 %v751_v26  ;;  %706 = vmatprep.subr.bf16.mxu0 %v705_v27  ;;  %v771_v26 = vpack.c.bf16 %v176_v19, %v168_v17  ;;  %v725_v27 = vpack.c.bf16 %v191_v22, %v183_v20 }
  0x4b   :  { %754 = vmatprep.subr.bf16.mxu1 %v753_v31  ;;  %v773_v31 = vpack.c.bf16 %v193_v24, %v185_v23 }
  0x4d   :  { %708 = vmatpush1.bf16.msra.mxu0 %v707_v38  ;;  %v727_v38 = vpack.c.bf16 %v190_v29, %v182_v28 }
  0x4e   :  { %756 = vmatpush1.bf16.msra.mxu1 %v755_v40  ;;  %710 = vmatprep.subr.bf16.mxu0 %v709_v41  ;;  %v729_v40 = vpack.c.bf16 %v207_v35, %v199_v34  ;;  %v198_v41 = vld [vmem:[%s1466_s0 + $0x5a0] sm:$0xff] }
  0x4f   :  { %758 = vmatprep.subr.bf16.mxu1 %v757_v44  ;;  %v208_v44 = vld [vmem:[%s1466_s0 + $0x5f0] sm:$0xff]  ;;  %v731_v45 = vpack.c.bf16 %v206_v42, %v198_v41 }
  0x50   :  { %v779_v46 = vpack.c.bf16 %v208_v44, %v200_v53 }
  0x51   :  { %712 = vmatpush1.bf16.msra.mxu0 %v711_v50  ;;  %v216_v50 = vld [vmem:[%s1466_s0 + $0x630] sm:$0xff] }
  0x52   :  { %760 = vmatpush1.bf16.msra.mxu1 %v759_v51  ;;  %714 = vmatprep.subr.bf16.mxu0 %v713_v52 }
  0x53   :  { %762 = vmatprep.subr.bf16.mxu1 %v761_v57 }
  0x55   :  { %716 = vmatpush1.bf16.msra.mxu0 %v715_v63 }
  0x56   :  { %764 = vmatpush1.bf16.msra.mxu1 %v763_v0  ;;  %718 = vmatprep.subr.bf16.mxu0 %v717_v1 }
  0x57   :  { %766 = vmatprep.subr.bf16.mxu1 %v765_v5 }
  0x59   :  { %720 = vmatpush1.bf16.msra.mxu0 %v719_v11 }
  0x5a   :  { %768 = vmatpush1.bf16.msra.mxu1 %v767_v13  ;;  %722 = vmatprep.subr.bf16.mxu0 %v721_v14 }
  0x5b   :  { %770 = vmatprep.subr.bf16.mxu1 %v769_v18 }
  0x5d   :  { %724 = vmatpush1.bf16.msra.mxu0 %v723_v25 }
  0x5e   :  { %772 = vmatpush1.bf16.msra.mxu1 %v771_v26  ;;  %726 = vmatprep.subr.bf16.mxu0 %v725_v27 }
  0x5f   :  { %774 = vmatprep.subr.bf16.mxu1 %v773_v31 }
  0x61   :  { %728 = vmatpush1.bf16.msra.mxu0 %v727_v38 }
  0x62   :  { %776 = vmatpush1.bf16.msra.mxu1 %v775_v39  ;;  %730 = vmatprep.subr.bf16.mxu0 %v729_v40 }
  0x63   :  { %778 = vmatprep.subr.bf16.mxu1 %v777_v43 }
  0x65   :  { %732 = vmatpush1.bf16.msra.mxu0 %v731_v45 }
  0x66   :  { %780 = vmatpush1.bf16.msra.mxu1 %v779_v46  ;;  %439 = vmatprep.subr.mxu0 %v215_v47 }
  0x67   :  { %516 = vmatprep.subr.mxu1 %v217_v48 }
  0x69   :  { %440 = vmatpush1.msra.mxu0 %v214_v49 }
  0x6a   :  { %517 = vmatpush1.msra.mxu1 %v216_v50  ;;  %456 = vmatmul.mubr.f32.vlgmr.msra.gmra.mrb[4].mxu0 %v1146_v32 }
  0x6b   :  { %533 = vmatmul.mubr.f32.vlgmr.msra.gmra.mrb[4].mxu1 %v1146_v32  ;;  %586 = vmatprep.mubr.msk.f32.mxu0 %vm230_vm0, %v1234_v12 }
  0x6c   :  { %588 = vmatprep.mubr.msk.f32.mxu1 %vm230_vm0, %v1234_v12 }
  0x6e   :  { %462 = vmatmul.mubr.f32.gmra.mrb[6].mxu0 %v1256_v21 }
  0x6f   :  { %539 = vmatmul.mubr.f32.gmra.mrb[6].mxu1 %v1256_v21 }
  0xb1   :  { %v223_v51 = vpop.permute.xlu0 %222 }
  0xbf   :  { %v228_v12 = vpop.permute.xlu0 %227 }
 0x10a   :  { %v303_v52 = vpop.f32.mrb[0].mxu0 }
 0x10b   :  { %v380_v54 = vpop.f32.mrb[0].mxu1  ;;  %v305_v55 = vpop.f32.mrb[1].mxu0  ;;  %v304_v56 = vadd.f32 %v303_v52, %v223_v51 }
 0x10c   :  { %v306_v57 = vadd.f32 %v305_v55, %v223_v51  ;;  %v382_v58 = vpop.f32.mrb[1].mxu1  ;;  %v381_v59 = vadd.f32 %v380_v54, %v223_v51 }
 0x10d   :  { %v383_v60 = vadd.f32 %v382_v58, %v223_v51  ;;  %v545_v32 = vmax.f32 %v304_v56, 0.0 }
 0x10e   :  { %v546_v61 = vmax.f32 %v306_v57, 0.0  ;;  %v547_v62 = vmax.f32 %v381_v59, 0.0 }
 0x10f   :  { %v548_v63 = vmax.f32 %v383_v60, 0.0  ;;  %v309_v2 = vpop.f32.mrb[2].mxu0 }
 0x110   :  { %v561_v0 = vmax.f32 %v545_v32, %v547_v62  ;;  %v386_v3 = vpop.f32.mrb[2].mxu1  ;;  %v311_v4 = vpop.f32.mrb[3].mxu0  ;;  %v310_v21 = vadd.f32 %v309_v2, %v228_v12 }
 0x111   :  { %v562_v1 = vmax.f32 %v546_v61, %v548_v63  ;;  %v312_v5 = vadd.f32 %v311_v4, %v228_v12  ;;  %v388_v6 = vpop.f32.mrb[3].mxu1  ;;  %v387_v7 = vadd.f32 %v386_v3, %v228_v12 }
 0x112   :  { %v389_v8 = vadd.f32 %v388_v6, %v228_v12  ;;  %v553_v9 = vmax.f32 %v310_v21, 0.0 }
 0x113   :  { %v554_v10 = vmax.f32 %v312_v5, 0.0  ;;  %v555_v11 = vmax.f32 %v387_v7, 0.0 }
 0x114   :  { %v556_v13 = vmax.f32 %v389_v8, 0.0 }
 0x115   :  { %v563_v14 = vmax.f32 %v553_v9, %v555_v11 }
 0x116   :  { %v564_v15 = vmax.f32 %v554_v10, %v556_v13 }
 0x13d   :  { %v457_v16 = vpop.f32.mrb[4].mxu0 }
 0x13e   :  { %v458_v17 = vadd.f32 %v457_v16, %v223_v51  ;;  %v534_v18 = vpop.f32.mrb[4].mxu1  ;;  %v459_v19 = vpop.f32.mrb[5].mxu0 }
 0x13f   :  { %v535_v20 = vadd.f32 %v534_v18, %v223_v51  ;;  %v460_v22 = vadd.f32 %v459_v19, %v223_v51  ;;  %v536_v23 = vpop.f32.mrb[5].mxu1 }
 0x140   :  { %v549_v24 = vmax.f32 %v458_v17, 0.0  ;;  %v537_v25 = vadd.f32 %v536_v23, %v223_v51 }
 0x141   :  { %v551_v26 = vmax.f32 %v535_v20, 0.0  ;;  %v550_v27 = vmax.f32 %v460_v22, 0.0  ;;  %v463_v28 = vpop.f32.mrb[6].mxu0 }
 0x142   :  { %v552_v29 = vmax.f32 %v537_v25, 0.0  ;;  %v464_v30 = vadd.f32 %v463_v28, %v228_v12  ;;  %v540_v31 = vpop.f32.mrb[6].mxu1  ;;  %v465_v33 = vpop.f32.mrb[7].mxu0 }
 0x143   :  { %v565_v34 = vmax.f32 %v549_v24, %v551_v26  ;;  %v541_v35 = vadd.f32 %v540_v31, %v228_v12  ;;  %v466_v36 = vadd.f32 %v465_v33, %v228_v12  ;;  %v542_v37 = vpop.f32.mrb[7].mxu1 }
 0x144   :  { %v566_v38 = vmax.f32 %v550_v27, %v552_v29  ;;  %v557_v39 = vmax.f32 %v464_v30, 0.0  ;;  %v543_v40 = vadd.f32 %v542_v37, %v228_v12 }
 0x145   :  { %v569_v41 = vmax.f32 %v561_v0, %v565_v34  ;;  %v559_v42 = vmax.f32 %v541_v35, 0.0  ;;  %v558_v43 = vmax.f32 %v466_v36, 0.0 }
 0x146   :  { %v570_v53 = vmax.f32 %v562_v1, %v566_v38  ;;  %v560_v44 = vmax.f32 %v543_v40, 0.0 }
 0x147   :  { %573 = vst [vmem:[%s1469_s3] sm:$0xff] %v569_v41  ;;  %v567_v45 = vmax.f32 %v557_v39, %v559_v42 }
 0x148   :  { %574 = vst [vmem:[%s1469_s3 + $0x8] sm:$0xff] %v570_v53  ;;  %v568_v46 = vmax.f32 %v558_v43, %v560_v44 }
 0x149   :  { %v571_v47 = vmax.f32 %v563_v14, %v567_v45 }
 0x14a   :  { %v572_v48 = vmax.f32 %v564_v15, %v568_v46 }
 0x14b   :  { %575 = vst [vmem:[%s1469_s3 + $0x10] sm:$0xff] %v571_v47 }
 0x14c   :  { %576 = vst [vmem:[%s1469_s3 + $0x18] sm:$0xff] %v572_v48 }

// kernel: forward.5
= control target key start
LH: loop header
LB: loop body
LE: loop exit
PB: predicated region body
PF: predicated region fallthrough
CT: control target
= control target key end

     0   :  { %v1238_v2 = vmov 0.0|0.0   ;;  %vm147_vm0 = vcmask 130048   ;;  %vm1239_vm1 = vmmov 0   ;;  %vm530_vm2 = vcmask 261120   ;;  %s1779_s1 = inlined_call_operand.vmem [shape: f32[400,32], index: 1, kind: input, shape index: {}]   ;;  %s1780_s0 = inlined_call_operand.vmem [shape: f32[128,400], index: 0, kind: input, shape index: {}]   ;;  %s1781_s3 = inlined_call_operand.vmem [shape: f32[128,64], index: 3, kind: input, shape index: {}]   ;;  %s1782_s2 = inlined_call_operand.vmem [shape: f32[1,32], index: 2, kind: input, shape index: {}]   ;;  %s1783_s5 = inlined_call_operand.vmem [shape: f32[64,2], index: 5, kind: input, shape index: {}]   ;;  %s1784_s4 = inlined_call_operand.vmem [shape: f32[1,64], index: 4, kind: input, shape index: {}]   ;;  %s1785_s6 = inlined_call_operand.vmem [shape: f32[1,2], index: 6, kind: input, shape index: {}]   ;;  %s1786_s7 = inlined_call_operand.vmem [shape: f32[8,2], index: 7, kind: output, shape index: {}]  }
   0x1   :  { %v106_v0 = vld [vmem:[%s1779_s1 + $0x80] sm:$0xff]  ;;  %v107_v1 = vld [vmem:[%s1779_s1 + $0x88] sm:$0xff]  ;;  %1168 = vmatprep.subr.bf16.mxu1 %v1238_v2  ;;  %v108_v10 = vld [vmem:[%s1779_s1 + $0x90] sm:$0xff]  ;;  %vm849_vm3 = vcmask 523264   ;;  %vm923_vm4 = vcmask 15360  }
   0x2   :  { %v90_v3 = vld [vmem:[%s1779_s1] sm:$0xff]  ;;  %v1136_v4 = vpack.c.bf16 %v107_v1, %v106_v0  ;;  %v91_v5 = vld [vmem:[%s1779_s1 + $0x8] sm:$0xff]  ;;  %v109_v11 = vld [vmem:[%s1779_s1 + $0x98] sm:$0xff] }
   0x3   :  { %v122_v6 = vld [vmem:[%s1779_s1 + $0x100] sm:$0xff]  ;;  %v123_v7 = vld [vmem:[%s1779_s1 + $0x108] sm:$0xff]  ;;  %v1138_v8 = vpack.c.bf16 %v91_v5, %v90_v3  ;;  %v92_v12 = vld [vmem:[%s1779_s1 + $0x10] sm:$0xff]  ;;  %v1140_v13 = vpack.c.bf16 %v109_v11, %v108_v10 }
   0x4   :  { %v1169_v9 = vpack.c.bf16 %v123_v7, %v122_v6  ;;  %1137 = vmatprep.subr.bf16.mxu0 %v1136_v4  ;;  %v93_v14 = vld [vmem:[%s1779_s1 + $0x18] sm:$0xff]  ;;  %v124_v15 = vld [vmem:[%s1779_s1 + $0x110] sm:$0xff]  ;;  %v110_v19 = vld [vmem:[%s1779_s1 + $0xa0] sm:$0xff] }
   0x5   :  { %v125_v16 = vld [vmem:[%s1779_s1 + $0x118] sm:$0xff]  ;;  %1139 = vmatpush3.bf16.msra.mxu0 %v1138_v8  ;;  %v1142_v17 = vpack.c.bf16 %v93_v14, %v92_v12  ;;  %v111_v20 = vld [vmem:[%s1779_s1 + $0xa8] sm:$0xff]  ;;  %v94_v21 = vld [vmem:[%s1779_s1 + $0x20] sm:$0xff] }
   0x6   :  { %1170 = vmatpush1.bf16.msra.mxu1 %v1169_v9  ;;  %v1172_v18 = vpack.c.bf16 %v125_v16, %v124_v15  ;;  %1141 = vmatprep.subr.bf16.mxu0 %v1140_v13  ;;  %v1144_v22 = vpack.c.bf16 %v111_v20, %v110_v19  ;;  %v95_v23 = vld [vmem:[%s1779_s1 + $0x28] sm:$0xff]  ;;  %v126_v24 = vld [vmem:[%s1779_s1 + $0x120] sm:$0xff]  ;;  %v112_v26 = vld [vmem:[%s1779_s1 + $0xb0] sm:$0xff] }
   0x7   :  { %1171 = vmatprep.subr.bf16.mxu1 %v1238_v2  ;;  %v127_v25 = vld [vmem:[%s1779_s1 + $0x128] sm:$0xff]  ;;  %v113_v27 = vld [vmem:[%s1779_s1 + $0xb8] sm:$0xff]  ;;  %v1146_v28 = vpack.c.bf16 %v95_v23, %v94_v21  ;;  %v96_v30 = vld [vmem:[%s1779_s1 + $0x30] sm:$0xff] }
   0x8   :  { %v1175_v29 = vpack.c.bf16 %v127_v25, %v126_v24  ;;  %v1148_v31 = vpack.c.bf16 %v113_v27, %v112_v26  ;;  %v97_v32 = vld [vmem:[%s1779_s1 + $0x38] sm:$0xff]  ;;  %v128_v33 = vld [vmem:[%s1779_s1 + $0x130] sm:$0xff]  ;;  %v114_v35 = vld [vmem:[%s1779_s1 + $0xc0] sm:$0xff] }
   0x9   :  { %1143 = vmatpush3.bf16.msra.mxu0 %v1142_v17  ;;  %v129_v34 = vld [vmem:[%s1779_s1 + $0x138] sm:$0xff]  ;;  %v115_v36 = vld [vmem:[%s1779_s1 + $0xc8] sm:$0xff]  ;;  %v1150_v37 = vpack.c.bf16 %v97_v32, %v96_v30  ;;  %v98_v39 = vld [vmem:[%s1779_s1 + $0x40] sm:$0xff] }
   0xa   :  { %1173 = vmatpush1.bf16.msra.mxu1 %v1172_v18  ;;  %1145 = vmatprep.subr.bf16.mxu0 %v1144_v22  ;;  %v1178_v38 = vpack.c.bf16 %v129_v34, %v128_v33  ;;  %v1152_v40 = vpack.c.bf16 %v115_v36, %v114_v35  ;;  %v99_v41 = vld [vmem:[%s1779_s1 + $0x48] sm:$0xff]  ;;  %v130_v42 = vld [vmem:[%s1779_s1 + $0x140] sm:$0xff]  ;;  %v116_v44 = vld [vmem:[%s1779_s1 + $0xd0] sm:$0xff] }
   0xb   :  { %1174 = vmatprep.subr.bf16.mxu1 %v1238_v2  ;;  %v131_v43 = vld [vmem:[%s1779_s1 + $0x148] sm:$0xff]  ;;  %v117_v45 = vld [vmem:[%s1779_s1 + $0xd8] sm:$0xff]  ;;  %v1154_v46 = vpack.c.bf16 %v99_v41, %v98_v39  ;;  %v100_v48 = vld [vmem:[%s1779_s1 + $0x50] sm:$0xff] }
   0xc   :  { %v1181_v47 = vpack.c.bf16 %v131_v43, %v130_v42  ;;  %v101_v49 = vld [vmem:[%s1779_s1 + $0x58] sm:$0xff]  ;;  %v27_v50 = vld [vmem:[%s1780_s0 + $0x8] sm:$0xff]  ;;  %v1156_v51 = vpack.c.bf16 %v117_v45, %v116_v44  ;;  %v132_v52 = vld [vmem:[%s1779_s1 + $0x150] sm:$0xff] }
   0xd   :  { %1147 = vmatpush3.bf16.msra.mxu0 %v1146_v28  ;;  %v133_v53 = vld [vmem:[%s1779_s1 + $0x158] sm:$0xff]  ;;  %v118_v55 = vld [vmem:[%s1779_s1 + $0xe0] sm:$0xff]  ;;  %v119_v56 = vld [vmem:[%s1779_s1 + $0xe8] sm:$0xff]  ;;  %260 = vmatprep.mubr.f32.mxu0 %v27_v50  ;;  %v1158_v57 = vpack.c.bf16 %v101_v49, %v100_v48 }
   0xe   :  { %1176 = vmatpush1.bf16.msra.mxu1 %v1175_v29  ;;  %1149 = vmatprep.subr.bf16.mxu0 %v1148_v31  ;;  %v29_v54 = vld [vmem:[%s1780_s0 + $0x18] sm:$0xff]  ;;  %v1184_v58 = vpack.c.bf16 %v133_v53, %v132_v52  ;;  %v102_v59 = vld [vmem:[%s1779_s1 + $0x60] sm:$0xff]  ;;  %v1160_v60 = vpack.c.bf16 %v119_v56, %v118_v55  ;;  %v103_v61 = vld [vmem:[%s1779_s1 + $0x68] sm:$0xff] }
   0xf   :  { %1177 = vmatprep.subr.bf16.mxu1 %v1238_v2  ;;  %941 = vmatprep.mubr.msk.f32.mxu1 %vm147_vm0, %v29_v54  ;;  %v134_v62 = vld [vmem:[%s1779_s1 + $0x160] sm:$0xff]  ;;  %v135_v63 = vld [vmem:[%s1779_s1 + $0x168] sm:$0xff]  ;;  %v120_v0 = vld [vmem:[%s1779_s1 + $0xf0] sm:$0xff]  ;;  %v1162_v3 = vpack.c.bf16 %v103_v61, %v102_v59 }
  0x10   :  { %v121_v1 = vld [vmem:[%s1779_s1 + $0xf8] sm:$0xff]  ;;  %v1187_v4 = vpack.c.bf16 %v135_v63, %v134_v62  ;;  %v104_v5 = vld [vmem:[%s1779_s1 + $0x70] sm:$0xff]  ;;  %v138_v12 = vld [vmem:[%s1779_s1 + $0x180] sm:$0xff] }
  0x11   :  { %1151 = vmatpush3.bf16.msra.mxu0 %v1150_v37  ;;  %v1164_v6 = vpack.c.bf16 %v121_v1, %v120_v0  ;;  %v105_v7 = vld [vmem:[%s1779_s1 + $0x78] sm:$0xff]  ;;  %v136_v8 = vld [vmem:[%s1779_s1 + $0x170] sm:$0xff]  ;;  %v139_v13 = vld [vmem:[%s1779_s1 + $0x188] sm:$0xff] }
  0x12   :  { %1179 = vmatpush1.bf16.msra.mxu1 %v1178_v38  ;;  %1153 = vmatprep.subr.bf16.mxu0 %v1152_v40  ;;  %v137_v9 = vld [vmem:[%s1779_s1 + $0x178] sm:$0xff]  ;;  %v1166_v10 = vpack.c.bf16 %v105_v7, %v104_v5  ;;  %v26_v14 = vld [vmem:[%s1780_s0] sm:$0xff]  ;;  %v1193_v15 = vpack.c.bf16 %v139_v13, %v138_v12  ;;  %v31_v16 = vld [vmem:[%s1780_s0 + $0x28] sm:$0xff] }
  0x13   :  { %1180 = vmatprep.subr.bf16.mxu1 %v1238_v2  ;;  %v1190_v11 = vpack.c.bf16 %v137_v9, %v136_v8  ;;  %v30_v17 = vld [vmem:[%s1780_s0 + $0x20] sm:$0xff]  ;;  %v28_v18 = vld [vmem:[%s1780_s0 + $0x10] sm:$0xff]  ;;  %v35_v19 = vld [vmem:[%s1780_s0 + $0x48] sm:$0xff] }
  0x14   :  { %v33_v20 = vld [vmem:[%s1780_s0 + $0x38] sm:$0xff]  ;;  %v34_v21 = vld [vmem:[%s1780_s0 + $0x40] sm:$0xff]  ;;  %v32_v22 = vld [vmem:[%s1780_s0 + $0x30] sm:$0xff] }
  0x15   :  { %1155 = vmatpush3.bf16.msra.mxu0 %v1154_v46  ;;  %v39_v23 = vld [vmem:[%s1780_s0 + $0x68] sm:$0xff]  ;;  %v37_v24 = vld [vmem:[%s1780_s0 + $0x58] sm:$0xff]  ;;  %v38_v25 = vld [vmem:[%s1780_s0 + $0x60] sm:$0xff] }
  0x16   :  { %1182 = vmatpush1.bf16.msra.mxu1 %v1181_v47  ;;  %1157 = vmatprep.subr.bf16.mxu0 %v1156_v51  ;;  %v36_v26 = vld [vmem:[%s1780_s0 + $0x50] sm:$0xff]  ;;  %v43_v27 = vld [vmem:[%s1780_s0 + $0x88] sm:$0xff]  ;;  %v41_v28 = vld [vmem:[%s1780_s0 + $0x78] sm:$0xff] }
  0x17   :  { %1183 = vmatprep.subr.bf16.mxu1 %v1238_v2  ;;  %v42_v29 = vld [vmem:[%s1780_s0 + $0x80] sm:$0xff]  ;;  %v40_v30 = vld [vmem:[%s1780_s0 + $0x70] sm:$0xff]  ;;  %v47_v31 = vld [vmem:[%s1780_s0 + $0xa8] sm:$0xff] }
  0x18   :  { %v45_v32 = vld [vmem:[%s1780_s0 + $0x98] sm:$0xff]  ;;  %v46_v33 = vld [vmem:[%s1780_s0 + $0xa0] sm:$0xff]  ;;  %v44_v34 = vld [vmem:[%s1780_s0 + $0x90] sm:$0xff] }
  0x19   :  { %1159 = vmatpush3.bf16.msra.mxu0 %v1158_v57  ;;  %v51_v35 = vld [vmem:[%s1780_s0 + $0xc8] sm:$0xff]  ;;  %v49_v36 = vld [vmem:[%s1780_s0 + $0xb8] sm:$0xff]  ;;  %v50_v37 = vld [vmem:[%s1780_s0 + $0xc0] sm:$0xff] }
  0x1a   :  { %1185 = vmatpush1.bf16.msra.mxu1 %v1184_v58  ;;  %1161 = vmatprep.subr.bf16.mxu0 %v1160_v60  ;;  %v48_v38 = vld [vmem:[%s1780_s0 + $0xb0] sm:$0xff]  ;;  %v55_v39 = vld [vmem:[%s1780_s0 + $0xe8] sm:$0xff]  ;;  %v53_v40 = vld [vmem:[%s1780_s0 + $0xd8] sm:$0xff] }
  0x1b   :  { %1186 = vmatprep.subr.bf16.mxu1 %v1238_v2  ;;  %v54_v41 = vld [vmem:[%s1780_s0 + $0xe0] sm:$0xff]  ;;  %v52_v42 = vld [vmem:[%s1780_s0 + $0xd0] sm:$0xff]  ;;  %v59_v43 = vld [vmem:[%s1780_s0 + $0x108] sm:$0xff] }
  0x1c   :  { %v57_v44 = vld [vmem:[%s1780_s0 + $0xf8] sm:$0xff]  ;;  %v58_v45 = vld [vmem:[%s1780_s0 + $0x100] sm:$0xff]  ;;  %v56_v46 = vld [vmem:[%s1780_s0 + $0xf0] sm:$0xff] }
  0x1d   :  { %1163 = vmatpush3.bf16.msra.mxu0 %v1162_v3  ;;  %v63_v47 = vld [vmem:[%s1780_s0 + $0x128] sm:$0xff]  ;;  %v61_v48 = vld [vmem:[%s1780_s0 + $0x118] sm:$0xff]  ;;  %v62_v49 = vld [vmem:[%s1780_s0 + $0x120] sm:$0xff] }
  0x1e   :  { %1188 = vmatpush1.bf16.msra.mxu1 %v1187_v4  ;;  %1165 = vmatprep.subr.bf16.mxu0 %v1164_v6  ;;  %v60_v50 = vld [vmem:[%s1780_s0 + $0x110] sm:$0xff]  ;;  %v67_v51 = vld [vmem:[%s1780_s0 + $0x148] sm:$0xff]  ;;  %v65_v52 = vld [vmem:[%s1780_s0 + $0x138] sm:$0xff] }
  0x1f   :  { %1189 = vmatprep.subr.bf16.mxu1 %v1238_v2  ;;  %v66_v53 = vld [vmem:[%s1780_s0 + $0x140] sm:$0xff]  ;;  %v64_v54 = vld [vmem:[%s1780_s0 + $0x130] sm:$0xff]  ;;  %v71_v55 = vld [vmem:[%s1780_s0 + $0x168] sm:$0xff] }
  0x20   :  { %v69_v56 = vld [vmem:[%s1780_s0 + $0x158] sm:$0xff]  ;;  %v70_v57 = vld [vmem:[%s1780_s0 + $0x160] sm:$0xff]  ;;  %v68_v58 = vld [vmem:[%s1780_s0 + $0x150] sm:$0xff] }
  0x21   :  { %1167 = vmatpush3.bf16.msra.mxu0 %v1166_v10  ;;  %v75_v59 = vld [vmem:[%s1780_s0 + $0x188] sm:$0xff]  ;;  %v73_v60 = vld [vmem:[%s1780_s0 + $0x178] sm:$0xff]  ;;  %v74_v61 = vld [vmem:[%s1780_s0 + $0x180] sm:$0xff] }
  0x22   :  { %1191 = vmatpush1.bf16.msra.mxu1 %v1190_v11  ;;  %1207 = vmatprep.subr.bf16.mxu0 %v1238_v2  ;;  %v72_v62 = vld [vmem:[%s1780_s0 + $0x170] sm:$0xff]  ;;  %v79_v63 = vld [vmem:[%s1780_s0 + $0x1a8] sm:$0xff]  ;;  %v77_v0 = vld [vmem:[%s1780_s0 + $0x198] sm:$0xff] }
  0x23   :  { %1192 = vmatprep.subr.bf16.mxu1 %v1238_v2  ;;  %v78_v1 = vld [vmem:[%s1780_s0 + $0x1a0] sm:$0xff]  ;;  %v76_v3 = vld [vmem:[%s1780_s0 + $0x190] sm:$0xff]  ;;  %v83_v4 = vld [vmem:[%s1780_s0 + $0x1c8] sm:$0xff] }
  0x24   :  { %261 = vmatmul.mubr.f32.vlgmr.msra.gmra.mrb[0].mxu0 %v26_v14  ;;  %v81_v5 = vld [vmem:[%s1780_s0 + $0x1b8] sm:$0xff]  ;;  %v82_v6 = vld [vmem:[%s1780_s0 + $0x1c0] sm:$0xff]  ;;  %v80_v7 = vld [vmem:[%s1780_s0 + $0x1b0] sm:$0xff] }
  0x25   :  { %265 = vmatprep.mubr.f32.mxu0 %v31_v16  ;;  %v87_v8 = vld [vmem:[%s1780_s0 + $0x1e8] sm:$0xff]  ;;  %v85_v9 = vld [vmem:[%s1780_s0 + $0x1d8] sm:$0xff]  ;;  %v86_v10 = vld [vmem:[%s1780_s0 + $0x1e0] sm:$0xff] }
  0x26   :  { %1194 = vmatpush1.bf16.msra.mxu1 %v1193_v15  ;;  %v84_v11 = vld [vmem:[%s1780_s0 + $0x1d0] sm:$0xff]  ;;  %v89_v12 = vld [vmem:[%s1780_s0 + $0x1f8] sm:$0xff]  ;;  %v518_v14 = vld [vmem:[%s1781_s3 + $0x20] sm:$0xff] }
  0x27   :  { %1195 = vmatprep.subr.bf16.mxu1 %v1238_v2  ;;  %v88_v13 = vld [vmem:[%s1780_s0 + $0x1f0] sm:$0xff]  ;;  %v519_v15 = vld [vmem:[%s1781_s3 + $0x28] sm:$0xff] }
  0x28   :  { %266 = vmatmul.mubr.f32.gmra.mrb[2].mxu0 %v30_v17  ;;  %v1196_v16 = vpack.c.bf16 %v519_v15, %v518_v14  ;;  %v522_v17 = vld [vmem:[%s1781_s3 + $0x40] sm:$0xff] }
  0x29   :  { %406 = vmatmul.mubr.f32.vlgmr.msra.gmra.mrb[0].mxu1 %v28_v18  ;;  %270 = vmatprep.mubr.f32.mxu0 %v35_v19  ;;  %v523_v18 = vld [vmem:[%s1781_s3 + $0x48] sm:$0xff] }
  0x2a   :  { %942 = vmatprep.mubr.msk.f32.mxu1 %vm147_vm0, %v33_v20  ;;  %1197 = vmatpush3.bf16.msra.mxu1 %v1196_v16  ;;  %v1208_v19 = vpack.c.bf16 %v523_v18, %v522_v17  ;;  %v520_v20 = vld [vmem:[%s1781_s3 + $0x30] sm:$0xff] }
  0x2b   :  { %1198 = vmatprep.subr.bf16.mxu1 %v1238_v2 }
  0x2c   :  { %271 = vmatmul.mubr.f32.gmra.mrb[4].mxu0 %v34_v21  ;;  %v521_v21 = vld [vmem:[%s1781_s3 + $0x38] sm:$0xff] }
  0x2d   :  { %411 = vmatmul.mubr.f32.gmra.mrb[2].mxu1 %v32_v22  ;;  %275 = vmatprep.mubr.f32.mxu0 %v39_v23  ;;  %v1199_v22 = vpack.c.bf16 %v521_v21, %v520_v20  ;;  %v524_v23 = vld [vmem:[%s1781_s3 + $0x50] sm:$0xff] }
  0x2e   :  { %943 = vmatprep.mubr.msk.f32.mxu1 %vm147_vm0, %v37_v24  ;;  %1209 = vmatpush3.bf16.msra.mxu0 %v1208_v19  ;;  %v525_v24 = vld [vmem:[%s1781_s3 + $0x58] sm:$0xff] }
  0x2f   :  { %1210 = vmatprep.subr.bf16.mxu0 %v1238_v2  ;;  %1200 = vmatpush3.bf16.msra.mxu1 %v1199_v22 }
  0x30   :  { %276 = vmatmul.mubr.f32.gmra.mrb[6].mxu0 %v38_v25  ;;  %1201 = vmatprep.subr.bf16.mxu1 %v1238_v2  ;;  %v1211_v25 = vpack.c.bf16 %v525_v24, %v524_v23 }
  0x31   :  { %416 = vmatmul.mubr.f32.gmra.mrb[4].mxu1 %v36_v26  ;;  %280 = vmatprep.mubr.f32.mxu0 %v43_v27  ;;  %v1240_v26 = vmov 0.0  }
  0x32   :  { %944 = vmatprep.mubr.msk.f32.mxu1 %vm147_vm0, %v41_v28  ;;  %1212 = vmatpush3.bf16.msra.mxu0 %v1211_v25 }
  0x33   :  { %1219 = vmatprep.subr.bf16.mxu0 %v1238_v2 }
  0x34   :  { %281 = vmatmul.mubr.f32.gmra.mrb[8].mxu0 %v42_v29  ;;  %v1685_v29 = vld [vmem:[%s1782_s2] ss:$0 sm:$0xff] }
  0x35   :  { %421 = vmatmul.mubr.f32.gmra.mrb[6].mxu1 %v40_v30  ;;  %285 = vmatprep.mubr.f32.mxu0 %v47_v31 }
  0x36   :  { %945 = vmatprep.mubr.msk.f32.mxu1 %vm147_vm0, %v45_v32 }
  0x38   :  { %286 = vmatmul.mubr.f32.gmra.mrb[10].mxu0 %v46_v33 }
  0x39   :  { %426 = vmatmul.mubr.f32.gmra.mrb[8].mxu1 %v44_v34  ;;  %290 = vmatprep.mubr.f32.mxu0 %v51_v35 }
  0x3a   :  { %946 = vmatprep.mubr.msk.f32.mxu1 %vm147_vm0, %v49_v36 }
  0x3c   :  { %291 = vmatmul.mubr.f32.gmra.mrb[12].mxu0 %v50_v37 }
  0x3d   :  { %431 = vmatmul.mubr.f32.gmra.mrb[10].mxu1 %v48_v38  ;;  %295 = vmatprep.mubr.f32.mxu0 %v55_v39 }
  0x3e   :  { %947 = vmatprep.mubr.msk.f32.mxu1 %vm147_vm0, %v53_v40 }
  0x40   :  { %296 = vmatmul.mubr.f32.gmra.mrb[14].mxu0 %v54_v41 }
  0x41   :  { %436 = vmatmul.mubr.f32.gmra.mrb[12].mxu1 %v52_v42  ;;  %300 = vmatprep.mubr.f32.mxu0 %v59_v43 }
  0x42   :  { %948 = vmatprep.mubr.msk.f32.mxu1 %vm147_vm0, %v57_v44 }
  0x44   :  { %301 = vmatmul.mubr.f32.gmra.mrb[16].mxu0 %v58_v45 }
  0x45   :  { %441 = vmatmul.mubr.f32.gmra.mrb[14].mxu1 %v56_v46  ;;  %305 = vmatprep.mubr.f32.mxu0 %v63_v47 }
  0x46   :  { %949 = vmatprep.mubr.msk.f32.mxu1 %vm147_vm0, %v61_v48 }
  0x48   :  { %306 = vmatmul.mubr.f32.gmra.mrb[18].mxu0 %v62_v49 }
  0x49   :  { %446 = vmatmul.mubr.f32.gmra.mrb[16].mxu1 %v60_v50  ;;  %310 = vmatprep.mubr.f32.mxu0 %v67_v51 }
  0x4a   :  { %950 = vmatprep.mubr.msk.f32.mxu1 %vm147_vm0, %v65_v52 }
  0x4c   :  { %311 = vmatmul.mubr.f32.gmra.mrb[20].mxu0 %v66_v53 }
  0x4d   :  { %451 = vmatmul.mubr.f32.gmra.mrb[18].mxu1 %v64_v54  ;;  %315 = vmatprep.mubr.f32.mxu0 %v71_v55 }
  0x4e   :  { %951 = vmatprep.mubr.msk.f32.mxu1 %vm147_vm0, %v69_v56 }
  0x50   :  { %316 = vmatmul.mubr.f32.gmra.mrb[22].mxu0 %v70_v57 }
  0x51   :  { %456 = vmatmul.mubr.f32.gmra.mrb[20].mxu1 %v68_v58  ;;  %320 = vmatprep.mubr.f32.mxu0 %v75_v59 }
  0x52   :  { %952 = vmatprep.mubr.msk.f32.mxu1 %vm147_vm0, %v73_v60 }
  0x54   :  { %321 = vmatmul.mubr.f32.gmra.mrb[24].mxu0 %v74_v61 }
  0x55   :  { %461 = vmatmul.mubr.f32.gmra.mrb[22].mxu1 %v72_v62  ;;  %325 = vmatprep.mubr.f32.mxu0 %v79_v63 }
  0x56   :  { %953 = vmatprep.mubr.msk.f32.mxu1 %vm147_vm0, %v77_v0 }
  0x58   :  { %326 = vmatmul.mubr.f32.gmra.mrb[26].mxu0 %v78_v1 }
  0x59   :  { %466 = vmatmul.mubr.f32.gmra.mrb[24].mxu1 %v76_v3  ;;  %330 = vmatprep.mubr.f32.mxu0 %v83_v4 }
  0x5a   :  { %954 = vmatprep.mubr.msk.f32.mxu1 %vm147_vm0, %v81_v5 }
  0x5c   :  { %331 = vmatmul.mubr.f32.gmra.mrb[28].mxu0 %v82_v6 }
  0x5d   :  { %471 = vmatmul.mubr.f32.gmra.mrb[26].mxu1 %v80_v7  ;;  %335 = vmatprep.mubr.f32.mxu0 %v87_v8 }
  0x5e   :  { %955 = vmatprep.mubr.msk.f32.mxu1 %vm147_vm0, %v85_v9 }
  0x60   :  { %336 = vmatmul.mubr.f32.gmra.mrb[30].mxu0 %v86_v10 }
  0x61   :  { %476 = vmatmul.mubr.f32.gmra.mrb[28].mxu1 %v84_v11  ;;  %1103 = vmatprep.mubr.msk.f32.mxu0 %vm1239_vm1, %v1240_v26 }
  0x62   :  { %956 = vmatprep.mubr.msk.f32.mxu1 %vm147_vm0, %v89_v12 }
  0x65   :  { %481 = vmatmul.mubr.f32.gmra.mrb[30].mxu1 %v88_v13 }
  0x66   :  { %1081 = vmatprep.mubr.msk.f32.mxu1 %vm1239_vm1, %v1240_v26 }
  0xf7   :  { %v996_v27 = vpop.f32.mrb[0].mxu0 }
  0xf8   :  { %v997_v28 = vpop.f32.mrb[1].mxu0 }
  0xf9   :  { %v998_v30 = vadd.f32 %v997_v28, %v996_v27 }
  0xfb   :  { %v999_v31 = vpop.f32.mrb[2].mxu0  ;;  %v263_v32 = vadd.f32 %v998_v30, %v1685_v29 }
  0xfc   :  { %v407_v33 = vpop.f32.mrb[0].mxu1  ;;  %v1000_v34 = vpop.f32.mrb[3].mxu0 }
  0xfd   :  { %v409_v35 = vpop.f32.mrb[1].mxu1  ;;  %v408_v36 = vadd.f32 %v407_v33, %v263_v32  ;;  %v1001_v37 = vadd.f32 %v1000_v34, %v999_v31 }
  0xff   :  { %v1002_v38 = vpop.f32.mrb[4].mxu0  ;;  %v268_v39 = vadd.f32 %v1001_v37, %v1685_v29  ;;  %v486_v3 = vmax.f32 %v408_v36, 0.0 }
 0x100   :  { %v412_v40 = vpop.f32.mrb[2].mxu1  ;;  %v1003_v41 = vpop.f32.mrb[5].mxu0 }
 0x101   :  { %v414_v42 = vpop.f32.mrb[3].mxu1  ;;  %v413_v43 = vadd.f32 %v412_v40, %v268_v39  ;;  %v1004_v44 = vadd.f32 %v1003_v41, %v1002_v38 }
 0x103   :  { %v1005_v45 = vpop.f32.mrb[6].mxu0  ;;  %v273_v46 = vadd.f32 %v1004_v44, %v1685_v29  ;;  %v487_v13 = vmax.f32 %v413_v43, 0.0 }
 0x104   :  { %v417_v47 = vpop.f32.mrb[4].mxu1  ;;  %v1006_v48 = vpop.f32.mrb[7].mxu0 }
 0x105   :  { %v419_v49 = vpop.f32.mrb[5].mxu1  ;;  %v418_v50 = vadd.f32 %v417_v47, %v273_v46  ;;  %v1007_v51 = vadd.f32 %v1006_v48, %v1005_v45 }
 0x107   :  { %v1008_v52 = vpop.f32.mrb[8].mxu0  ;;  %v278_v53 = vadd.f32 %v1007_v51, %v1685_v29  ;;  %v488_v23 = vmax.f32 %v418_v50, 0.0 }
 0x108   :  { %v422_v54 = vpop.f32.mrb[6].mxu1  ;;  %v1009_v55 = vpop.f32.mrb[9].mxu0 }
 0x109   :  { %v424_v56 = vpop.f32.mrb[7].mxu1  ;;  %v423_v57 = vadd.f32 %v422_v54, %v278_v53  ;;  %v1010_v58 = vadd.f32 %v1009_v55, %v1008_v52 }
 0x10b   :  { %v1011_v59 = vpop.f32.mrb[10].mxu0  ;;  %v283_v60 = vadd.f32 %v1010_v58, %v1685_v29  ;;  %v489_v35 = vmax.f32 %v423_v57, 0.0 }
 0x10c   :  { %v427_v61 = vpop.f32.mrb[8].mxu1  ;;  %v1012_v62 = vpop.f32.mrb[11].mxu0 }
 0x10d   :  { %v429_v63 = vpop.f32.mrb[9].mxu1  ;;  %v428_v0 = vadd.f32 %v427_v61, %v283_v60  ;;  %v1013_v1 = vadd.f32 %v1012_v62, %v1011_v59 }
 0x10f   :  { %v490_v4 = vmax.f32 %v428_v0, 0.0  ;;  %v1014_v5 = vpop.f32.mrb[12].mxu0  ;;  %v288_v6 = vadd.f32 %v1013_v1, %v1685_v29 }
 0x110   :  { %v432_v7 = vpop.f32.mrb[10].mxu1  ;;  %v1015_v8 = vpop.f32.mrb[13].mxu0 }
 0x111   :  { %v434_v9 = vpop.f32.mrb[11].mxu1  ;;  %v502_v10 = vmax.f32 %v486_v3, %v490_v4  ;;  %v433_v11 = vadd.f32 %v432_v7, %v288_v6  ;;  %v1016_v12 = vadd.f32 %v1015_v8, %v1014_v5 }
 0x113   :  { %v491_v14 = vmax.f32 %v433_v11, 0.0  ;;  %v1017_v15 = vpop.f32.mrb[14].mxu0  ;;  %v293_v16 = vadd.f32 %v1016_v12, %v1685_v29 }
 0x114   :  { %v437_v17 = vpop.f32.mrb[12].mxu1  ;;  %v1018_v18 = vpop.f32.mrb[15].mxu0 }
 0x115   :  { %v439_v19 = vpop.f32.mrb[13].mxu1  ;;  %v503_v20 = vmax.f32 %v487_v13, %v491_v14  ;;  %v438_v21 = vadd.f32 %v437_v17, %v293_v16  ;;  %v1019_v22 = vadd.f32 %v1018_v18, %v1017_v15 }
 0x117   :  { %v492_v24 = vmax.f32 %v438_v21, 0.0  ;;  %v1020_v25 = vpop.f32.mrb[16].mxu0  ;;  %v298_v27 = vadd.f32 %v1019_v22, %v1685_v29 }
 0x118   :  { %v442_v28 = vpop.f32.mrb[14].mxu1  ;;  %v1021_v30 = vpop.f32.mrb[17].mxu0 }
 0x119   :  { %v444_v31 = vpop.f32.mrb[15].mxu1  ;;  %v504_v32 = vmax.f32 %v488_v23, %v492_v24  ;;  %v443_v33 = vadd.f32 %v442_v28, %v298_v27  ;;  %v1022_v34 = vadd.f32 %v1021_v30, %v1020_v25  ;;  %v514_v28 = vld [vmem:[%s1781_s3] sm:$0xff]  ;;  %v515_v30 = vld [vmem:[%s1781_s3 + $0x8] sm:$0xff] }
 0x11b   :  { %v493_v36 = vmax.f32 %v443_v33, 0.0  ;;  %v1023_v37 = vpop.f32.mrb[18].mxu0  ;;  %v303_v38 = vadd.f32 %v1022_v34, %v1685_v29 }
 0x11c   :  { %v447_v39 = vpop.f32.mrb[16].mxu1  ;;  %v1024_v40 = vpop.f32.mrb[19].mxu0 }
 0x11d   :  { %v449_v41 = vpop.f32.mrb[17].mxu1  ;;  %v505_v42 = vmax.f32 %v489_v35, %v493_v36  ;;  %v448_v43 = vadd.f32 %v447_v39, %v303_v38  ;;  %v1025_v44 = vadd.f32 %v1024_v40, %v1023_v37  ;;  %v1202_v37 = vpack.c.bf16 %v515_v30, %v514_v28 }
 0x11e   :  { %v516_v41 = vld [vmem:[%s1781_s3 + $0x10] sm:$0xff] }
 0x11f   :  { %v494_v45 = vmax.f32 %v448_v43, 0.0  ;;  %v1026_v46 = vpop.f32.mrb[20].mxu0  ;;  %v308_v47 = vadd.f32 %v1025_v44, %v1685_v29 }
 0x120   :  { %v452_v48 = vpop.f32.mrb[18].mxu1  ;;  %v1027_v49 = vpop.f32.mrb[21].mxu0 }
 0x121   :  { %v454_v50 = vpop.f32.mrb[19].mxu1  ;;  %v506_v51 = vmax.f32 %v502_v10, %v494_v45  ;;  %v453_v52 = vadd.f32 %v452_v48, %v308_v47  ;;  %v1028_v53 = vadd.f32 %v1027_v49, %v1026_v46 }
 0x122   :  { %v526_v50 = vld [vmem:[%s1781_s3 + $0x60] sm:$0xff] }
 0x123   :  { %v495_v54 = vmax.f32 %v453_v52, 0.0  ;;  %v1029_v55 = vpop.f32.mrb[22].mxu0  ;;  %v313_v56 = vadd.f32 %v1028_v53, %v1685_v29 }
 0x124   :  { %v457_v57 = vpop.f32.mrb[20].mxu1  ;;  %v1030_v58 = vpop.f32.mrb[23].mxu0 }
 0x125   :  { %v459_v59 = vpop.f32.mrb[21].mxu1  ;;  %v507_v60 = vmax.f32 %v503_v20, %v495_v54  ;;  %v458_v61 = vadd.f32 %v457_v57, %v313_v56  ;;  %v1031_v62 = vadd.f32 %v1030_v58, %v1029_v55  ;;  %v528_v54 = vld [vmem:[%s1781_s3 + $0x70] sm:$0xff]  ;;  %v529_v55 = vld [vmem:[%s1781_s3 + $0x78] sm:$0xff]  ;;  %v834_v57 = vld [vmem:[%s1783_s5] sm:$0xff] }
 0x126   :  { %v1217_v56 = vpack.c.bf16 %v529_v55, %v528_v54  ;;  %v835_v58 = vld [vmem:[%s1783_s5 + $0x8] sm:$0xff] }
 0x127   :  { %v496_v63 = vmax.f32 %v458_v61, 0.0  ;;  %v1032_v0 = vpop.f32.mrb[24].mxu0  ;;  %v318_v1 = vadd.f32 %v1031_v62, %v1685_v29  ;;  %v1220_v59 = vpack.c.bf16 %v835_v58, %v834_v57  ;;  %v838_v62 = vld [vmem:[%s1783_s5 + $0x20] sm:$0xff] }
 0x128   :  { %v462_v3 = vpop.f32.mrb[22].mxu1  ;;  %v1033_v4 = vpop.f32.mrb[25].mxu0 }
 0x129   :  { %v464_v5 = vpop.f32.mrb[23].mxu1  ;;  %v508_v6 = vmax.f32 %v504_v32, %v496_v63  ;;  %v463_v7 = vadd.f32 %v462_v3, %v318_v1  ;;  %v1034_v8 = vadd.f32 %v1033_v4, %v1032_v0  ;;  %v839_v63 = vld [vmem:[%s1783_s5 + $0x28] sm:$0xff]  ;;  %v840_v1 = vld [vmem:[%s1783_s5 + $0x30] sm:$0xff]  ;;  %v841_v3 = vld [vmem:[%s1783_s5 + $0x38] sm:$0xff] }
 0x12a   :  { %v1226_v0 = vpack.c.bf16 %v839_v63, %v838_v62  ;;  %v1229_v4 = vpack.c.bf16 %v841_v3, %v840_v1 }
 0x12b   :  { %v497_v9 = vmax.f32 %v463_v7, 0.0  ;;  %v1035_v10 = vpop.f32.mrb[26].mxu0  ;;  %v323_v11 = vadd.f32 %v1034_v8, %v1685_v29 }
 0x12c   :  { %v467_v12 = vpop.f32.mrb[24].mxu1  ;;  %v1036_v13 = vpop.f32.mrb[27].mxu0 }
 0x12d   :  { %v469_v14 = vpop.f32.mrb[25].mxu1  ;;  %v509_v15 = vmax.f32 %v505_v42, %v497_v9  ;;  %v468_v16 = vadd.f32 %v467_v12, %v323_v11  ;;  %v1037_v17 = vadd.f32 %v1036_v13, %v1035_v10  ;;  %v517_v42 = vld [vmem:[%s1781_s3 + $0x18] sm:$0xff] }
 0x12e   :  { %v1205_v46 = vpack.c.bf16 %v517_v42, %v516_v41 }
 0x12f   :  { %v498_v18 = vmax.f32 %v468_v16, 0.0  ;;  %v1038_v19 = vpop.f32.mrb[28].mxu0  ;;  %v328_v20 = vadd.f32 %v1037_v17, %v1685_v29 }
 0x130   :  { %v472_v21 = vpop.f32.mrb[26].mxu1  ;;  %v1039_v22 = vpop.f32.mrb[29].mxu0 }
 0x131   :  { %v474_v23 = vpop.f32.mrb[27].mxu1  ;;  %v510_v24 = vmax.f32 %v506_v51, %v498_v18  ;;  %v473_v25 = vadd.f32 %v472_v21, %v328_v20  ;;  %v1040_v27 = vadd.f32 %v1039_v22, %v1038_v19  ;;  %v527_v51 = vld [vmem:[%s1781_s3 + $0x68] sm:$0xff]  ;;  %v962_v18 = vld [vmem:[%s1785_s6] ss:$0 sm:$0xff] }
 0x132   :  { %v1214_v52 = vpack.c.bf16 %v527_v51, %v526_v50 }
 0x133   :  { %v499_v31 = vmax.f32 %v473_v25, 0.0  ;;  %v1041_v32 = vpop.f32.mrb[30].mxu0  ;;  %v333_v33 = vadd.f32 %v1040_v27, %v1685_v29 }
 0x134   :  { %v477_v34 = vpop.f32.mrb[28].mxu1  ;;  %v1042_v35 = vpop.f32.mrb[31].mxu0 }
 0x135   :  { %v479_v36 = vpop.f32.mrb[29].mxu1  ;;  %v511_v38 = vmax.f32 %v507_v60, %v499_v31  ;;  %v1043_v39 = vadd.f32 %v1042_v35, %v1041_v32  ;;  %v478_v40 = vadd.f32 %v477_v34, %v333_v33  ;;  %v837_v60 = vld [vmem:[%s1783_s5 + $0x18] sm:$0xff] }
 0x137   :  { %v500_v43 = vmax.f32 %v478_v40, 0.0  ;;  %1082 = vmatmul.mubr.msk.f32.vlgmr.msra.gmra.mrb[32].mxu1 %vm530_vm2, %v511_v38  ;;  %v338_v44 = vadd.f32 %v1043_v39, %v1685_v29 }
 0x138   :  { %v482_v45 = vpop.f32.mrb[30].mxu1  ;;  %1203 = vmatpush3.bf16.msra.mxu1 %v1202_v37  ;;  %1092 = vmatprep.mubr.msk.f32.mxu1 %vm1239_vm1, %v1240_v26 }
 0x139   :  { %v484_v47 = vpop.f32.mrb[31].mxu1  ;;  %v512_v48 = vmax.f32 %v508_v6, %v500_v43  ;;  %v483_v49 = vadd.f32 %v482_v45, %v338_v44  ;;  %1204 = vmatprep.subr.bf16.mxu1 %v1238_v2 }
 0x13b   :  { %v501_v29 = vmax.f32 %v483_v49, 0.0  ;;  %1104 = vmatmul.mubr.msk.f32.vlgmr.msra.gmra.mrb[32].mxu0 %vm530_vm2, %v512_v48 }
 0x13c   :  { %1206 = vmatpush3.bf16.msra.mxu1 %v1205_v46  ;;  %1133 = vmatprep.mubr.msk.f32.mxu0 %vm1239_vm1, %v1240_v26 }
 0x13d   :  { %v513_v53 = vmax.f32 %v509_v15, %v501_v29  ;;  %1213 = vmatprep.subr.bf16.mxu1 %v1238_v2  ;;  %1221 = vmatpush3.bf16.msra.mxu0 %v1220_v59 }
 0x13e   :  { %1222 = vmatprep.subr.bf16.mxu0 %v1238_v2 }
 0x13f   :  { %1093 = vmatmul.mubr.msk.f32.vlgmr.msra.gmra.mrb[34].mxu1 %vm530_vm2, %v510_v24 }
 0x140   :  { %1215 = vmatpush3.bf16.msra.mxu1 %v1214_v52  ;;  %1114 = vmatprep.mubr.msk.f32.mxu1 %vm1239_vm1, %v1240_v26  ;;  %v836_v26 = vld [vmem:[%s1783_s5 + $0x10] sm:$0xff] }
 0x141   :  { %1216 = vmatprep.subr.bf16.mxu1 %v1238_v2  ;;  %v1223_v61 = vpack.c.bf16 %v837_v60, %v836_v26 }
 0x143   :  { %1224 = vmatpush3.bf16.msra.mxu0 %v1223_v61 }
 0x144   :  { %1218 = vmatpush3.bf16.msra.mxu1 %v1217_v56  ;;  %1225 = vmatprep.subr.bf16.mxu0 %v1238_v2 }
 0x147   :  { %1115 = vmatmul.mubr.msk.f32.vlgmr.msra.gmra.mrb[36].mxu1 %vm530_vm2, %v513_v53  ;;  %1227 = vmatpush3.bf16.msra.mxu0 %v1226_v0 }
 0x148   :  { %1228 = vmatprep.subr.bf16.mxu0 %v1238_v2  ;;  %v961_v2 = vld [vmem:[%s1784_s4] ss:$0 sm:$0xff] }
 0x14b   :  { %1230 = vmatpush3.bf16.msra.mxu0 %v1229_v4 }
 0x20a   :  { %v600_v5 = vpop.f32.mrb[32].mxu1 }
 0x20b   :  { %v1083_v6 = vpop.f32.mrb[33].mxu1 }
 0x20e   :  { %v746_v7 = vpop.f32.mrb[32].mxu0 }
 0x20f   :  { %v1105_v8 = vpop.f32.mrb[33].mxu0 }
 0x212   :  { %v673_v9 = vpop.f32.mrb[34].mxu1 }
 0x213   :  { %v674_v10 = vadd.f32 %v673_v9, %v600_v5  ;;  %v1094_v11 = vpop.f32.mrb[35].mxu1 }
 0x215   :  { %v750_v12 = vadd.f32 %v746_v7, %v674_v10 }
 0x21a   :  { %v820_v13 = vpop.f32.mrb[36].mxu1 }
 0x21b   :  { %v824_v14 = vadd.f32 %v820_v13, %v750_v12  ;;  %v1116_v15 = vpop.f32.mrb[37].mxu1 }
 0x21d   :  { %v832_v16 = vadd.f32 %v961_v2, %v824_v14 }
 0x21f   :  { %v833_v17 = vmax.f32 %v832_v16, 0.0 }
 0x221   :  { %1134 = vmatmul.mubr.msk.f32.vlgmr.msra.gmra.mrb[34].mxu0 %vm849_vm3, %v833_v17 }
 0x2f4   :  { %v919_v19 = vpop.f32.mrb[34].mxu0 }
 0x2f5   :  { %v920_v20 = vadd.f32 %v962_v18, %v919_v19  ;;  %v1135_v21 = vpop.f32.mrb[35].mxu0 }
 0x2f7   :  { %v924_v22 = vsel %vm923_vm4, %v920_v20, -inf }
 0x2f8   :  { %925 = vmax.xlane.f32.xlu0 %v924_v22 }
 0x385   :  { %v926_v23 = vpop.xlane.xlu0 %925 }
 0x386   :  { %v927_v24 = vsub.f32 %v920_v20, %v926_v23 }
 0x388   :  { %v928_v25 = vmul.f32 1.442695, %v927_v24 }
 0x38a   :  { %1234 = vpow2.f32 %v928_v25 }
 0x394   :  { %v1235_v27 = vpop.eup %1234 }
 0x395   :  { %v930_v28 = vsel %vm923_vm4, %v1235_v27, 0.0 }
 0x396   :  { %931 = vadd.xlane.f32.xlu0 %v930_v28 }
 0x423   :  { %v932_v30 = vpop.xlane.xlu0 %931 }
 0x424   :  { %1236 = vrcp.f32 %v932_v30 }
 0x42e   :  { %v1237_v31 = vpop.eup %1236 }
 0x42f   :  { %v934_v32 = vmul.f32 %v1237_v31, %v1235_v27 }
 0x431   :  { %935 = vst.msk [vmem:[%s1786_s7] sm:$0xff] %vm923_vm4, %v934_v32 }

</bundles_post_ra>
